<compile_context>
chip_gen: v6e
topology: v6e:2x2x1
jax: 0.10.0
libtpu: 0.0.40
codegen_flags: <defaults>
</compile_context>

<pallas_src>
import functools

import jax
import jax.numpy as jnp
from jax.experimental import pallas as pl
from jax.experimental.pallas import tpu as pltpu


MM_DTYPE = jnp.bfloat16   # MXU operand dtype (f32 accumulation / epilogue)
LANE = 128                # pad K / N to lane multiples
SUB = 8                   # pad M to sublane multiples
BLOCK_M = 128             # M tile ("parallel" grid axis)


def _round_up(x, m):
    return (x + m - 1) // m * m


# ----------------------------- Pallas kernel --------------------------------
# One kernel serves the whole net: out = relu(A @ W + b), optionally followed
# by a fused 2x2 max-pool expressed as a max over `pool` equal lane blocks.

def _mm_bias_relu_kernel(a_ref, w_ref, b_ref, o_ref, *, pool):
    acc = jnp.dot(a_ref[...], w_ref[...], preferred_element_type=jnp.float32)
    y = jnp.maximum(acc + b_ref[...], 0.0)           # bias + ReLU in f32
    if pool > 1:                                      # fused 2x2 max-pool
        c = y.shape[1] // pool
        m = y[:, 0:c]
        for q in range(1, pool):
            m = jnp.maximum(m, y[:, q * c:(q + 1) * c])
        y = m
    o_ref[...] = y


def mm_bias_relu(a, w, b, *, pool=1, block_m=BLOCK_M):
    """relu(a @ w + b), then max over `pool` equal lane blocks.

    a: (M, K) f32/bf16, w: (K, N) bf16, b: (1, N) f32 -> (M, N // pool) f32.
    """
    M, K = a.shape
    K2, N = w.shape
    assert K == K2 and N % pool == 0
    n_out = N // pool

    tm = min(block_m, _round_up(M, SUB))
    mp = _round_up(M, tm)                # exact blocks, no partial tiles
    if mp != M:
        a = jnp.pad(a, ((0, mp - M), (0, 0)))
    a = a.astype(MM_DTYPE)

    out = pl.pallas_call(
        functools.partial(_mm_bias_relu_kernel, pool=pool),
        out_shape=jax.ShapeDtypeStruct((mp, n_out), jnp.float32),
        grid=(mp // tm,),
        in_specs=[
            pl.BlockSpec((tm, K), lambda i: (i, 0)),
            pl.BlockSpec((K, N), lambda i: (0, 0)),
            pl.BlockSpec((1, N), lambda i: (0, 0)),
        ],
        out_specs=pl.BlockSpec((tm, n_out), lambda i: (i, 0)),
        compiler_params=pltpu.CompilerParams(
            dimension_semantics=("parallel",)),
    )(a, w, b)
    return out[:M] if mp != M else out


# --------------------------- layer glue (XLA, tiny) --------------------------

def _pad_last(x, n):
    if x.shape[-1] == n:
        return x
    pad = [(0, 0)] * (x.ndim - 1) + [(0, n - x.shape[-1])]
    return jnp.pad(x, pad)


def conv_relu_pool(x, wm, bias, cout):
    """Fused 3x3/pad=1 conv + ReLU + 2x2 maxpool.  x: (B,H,W,Cin) NHWC."""
    B, H, W, cin = x.shape
    ho, wo = H // 2, W // 2
    xp = jnp.pad(x, ((0, 0), (1, 1), (1, 1), (0, 0)))
    # 4x4 stride-2 patches = union of the four 3x3 receptive fields per pool
    # window; one (pooled) im2col row per pooled output pixel.
    cols = [xp[:, dy::2, dx::2, :][:, :ho, :wo, :]
            for dy in range(4) for dx in range(4)]
    a = jnp.concatenate(cols, axis=-1).reshape(B * ho * wo, 16 * cin)
    a = _pad_last(a, wm.shape[0])
    out = mm_bias_relu(a, wm, bias, pool=4)
    return out.reshape(B, ho, wo, cout)


def tconv1_relu(x, wm, bias, cout):
    """ConvTranspose2d(k=3, stride=2, pad=0) + ReLU via sub-pixel phases."""
    B, hi, wi, cin = x.shape
    ho, wo = 2 * hi + 1, 2 * wi + 1
    hp, wp = hi + 1, wi + 1                      # phase-grid extent
    xp = jnp.pad(x, ((0, 0), (1, 1), (1, 1), (0, 0)))
    cols = [xp[:, dy:dy + hp, dx:dx + wp, :]
            for dy in range(2) for dx in range(2)]
    a = jnp.concatenate(cols, axis=-1).reshape(B * hp * wp, 4 * cin)
    a = _pad_last(a, wm.shape[0])
    y = mm_bias_relu(a, wm, bias).reshape(B, hp, wp, 2, 2, cout)
    out = jnp.zeros((B, ho, wo, cout), jnp.float32)
    out = out.at[:, 0::2, 0::2].set(y[:, :, :, 0, 0])
    out = out.at[:, 0::2, 1::2].set(y[:, :, :wi, 0, 1])
    out = out.at[:, 1::2, 0::2].set(y[:, :hi, :, 1, 0])
    out = out.at[:, 1::2, 1::2].set(y[:, :hi, :wi, 1, 1])
    return out


def tconv_s2k2_relu(x, wm, bias, cout):
    """ConvTranspose2d(k=2, stride=2, pad=0) + ReLU == one pointwise matmul
    producing all 4 sub-pixel phases, then depth-to-space."""
    B, hi, wi, cin = x.shape
    a = _pad_last(x.reshape(B * hi * wi, cin), wm.shape[0])
    y = mm_bias_relu(a, wm, bias)                           # (B*hi*wi, >=4*cout)
    y = y[:, :4 * cout].reshape(B, hi, wi, 2, 2, cout)
    y = jnp.transpose(y, (0, 1, 3, 2, 4, 5)).reshape(B, 2 * hi, 2 * wi, cout)
    return y


# ------------------- parameter init + one-time weight packing ----------------

def _uniform(key, shape, bound):
    return jax.random.uniform(key, shape, jnp.float32, -bound, bound)


def _pack_conv_pool(w, b):
    """(Cout,Cin,3,3) conv weight -> (16*Cin [pad 128], 4*Cout) matrix mapping
    a 4x4 input patch to the four conv outputs of one 2x2 pool window."""
    cout, cin, kh, kw = w.shape
    wbig = jnp.zeros((4, 4, cin, 4, cout), jnp.float32)      # (dy,dx,cin,q,cout)
    for a in range(2):
        for c in range(2):
            q = 2 * a + c
            for di in range(kh):
                for dj in range(kw):
                    wbig = wbig.at[a + di, c + dj, :, q, :].set(w[:, :, di, dj].T)
    wm = wbig.reshape(16 * cin, 4 * cout)
    wm = jnp.pad(wm, ((0, _round_up(16 * cin, LANE) - 16 * cin), (0, 0)))
    bias = jnp.tile(b, 4)[None, :]
    return wm.astype(MM_DTYPE), bias


def _pack_tconv1(w, b):
    """(Cin,Cout,3,3) stride-2 ConvTranspose weight -> (4*Cin, 4*Cout) phase
    matrix over 2x2 patches of the 1-padded input."""
    cin, cout, _, _ = w.shape
    kmap = {(1, 0): 0, (0, 0): 2, (1, 1): 1}    # (patch offset, phase) -> tap
    w5 = jnp.zeros((2, 2, cin, 4, cout), jnp.float32)
    for a in range(2):
        for c in range(2):
            q = 2 * a + c
            for dy in range(2):
                for dx in range(2):
                    if (dy, a) in kmap and (dx, c) in kmap:
                        ki, kj = kmap[(dy, a)], kmap[(dx, c)]
                        w5 = w5.at[dy, dx, :, q, :].set(w[:, :, ki, kj])
    wm = w5.reshape(4 * cin, 4 * cout)
    wm = jnp.pad(wm, ((0, _round_up(4 * cin, LANE) - 4 * cin), (0, 0)))
    bias = jnp.tile(b, 4)[None, :]
    return wm.astype(MM_DTYPE), bias


def _pack_tconv_s2k2(w, b):
    """(Cin,Cout,2,2) stride-2 ConvTranspose weight -> (Cin [pad 128],
    4*Cout [pad 128]) pointwise phase matrix (lane-dense K and N)."""
    cin, cout, _, _ = w.shape
    wm = jnp.transpose(w, (0, 2, 3, 1)).reshape(cin, 4 * cout)
    bias = jnp.tile(b, 4)[None, :]
    kp = _round_up(cin, LANE)
    np_ = _round_up(4 * cout, LANE)
    wm = jnp.pad(wm, ((0, kp - cin), (0, np_ - 4 * cout)))
    bias = jnp.pad(bias, ((0, 0), (0, np_ - 4 * cout)))
    return wm.astype(MM_DTYPE), bias


def init_params(key):
    ks = jax.random.split(key, 12)

    def conv_wb(kw_, kb_, cout, cin, k):
        bound = 1.0 / float(cin * k * k) ** 0.5
        return (_uniform(kw_, (cout, cin, k, k), bound),
                _uniform(kb_, (cout,), bound))

    def tconv_wb(kw_, kb_, cin, cout, k):
        bound = 1.0 / float(cout * k * k) ** 0.5
        return (_uniform(kw_, (cin, cout, k, k), bound),
                _uniform(kb_, (cout,), bound))

    raw = {
        "conv1": conv_wb(ks[0], ks[1], 32, 3, 3),
        "conv2": conv_wb(ks[2], ks[3], 64, 32, 3),
        "conv3": conv_wb(ks[4], ks[5], 128, 64, 3),
        "tconv1": tconv_wb(ks[6], ks[7], 128, 64, 3),
        "tconv2": tconv_wb(ks[8], ks[9], 64, 32, 2),
        "tconv3": tconv_wb(ks[10], ks[11], 32, 3, 2),
    }
    packed = {
        "conv1": _pack_conv_pool(*raw["conv1"]),
        "conv2": _pack_conv_pool(*raw["conv2"]),
        "conv3": _pack_conv_pool(*raw["conv3"]),
        "tconv1": _pack_tconv1(*raw["tconv1"]),
        "tconv2": _pack_tconv_s2k2(*raw["tconv2"]),
        "tconv3": _pack_tconv_s2k2(*raw["tconv3"]),
    }
    return raw, packed


# ---------------------------------- model ------------------------------------

def model_forward(x_nchw, packed):
    x = jnp.transpose(x_nchw, (0, 2, 3, 1))                  # NCHW -> NHWC
    x = conv_relu_pool(x, *packed["conv1"], cout=32)
    x = conv_relu_pool(x, *packed["conv2"], cout=64)
    x = conv_relu_pool(x, *packed["conv3"], cout=128)
    x = tconv1_relu(x, *packed["tconv1"], cout=64)
    x = tconv_s2k2_relu(x, *packed["tconv2"], cout=32)
    x = tconv_s2k2_relu(x, *packed["tconv3"], cout=3)
    return jnp.transpose(x, (0, 3, 1, 2))                    # NHWC -> NCHW


# ---------------------------- pure-JAX reference -----------------------------

def ref_forward(x_nchw, raw):
    dn = ("NHWC", "HWIO", "NHWC")
    x = jnp.transpose(x_nchw, (0, 2, 3, 1))

    def conv(x, w, b, pad):
        w_hwio = jnp.transpose(w, (2, 3, 1, 0))
        y = jax.lax.conv_general_dilated(x, w_hwio, (1, 1),
                                         [(pad, pad), (pad, pad)],
                                         dimension_numbers=dn)
        return jax.nn.relu(y + b)

    def pool(x):
        return jax.lax.reduce_window(x, -jnp.inf, jax.lax.max,
                                     (1, 2, 2, 1), (1, 2, 2, 1), "VALID")

    def tconv(x, w, b, stride):
        k = w.shape[2]
        w_hwio = jnp.transpose(w[:, :, ::-1, ::-1], (2, 3, 0, 1))  # H W Cin Cout
        y = jax.lax.conv_general_dilated(x, w_hwio, (1, 1),
                                         [(k - 1, k - 1), (k - 1, k - 1)],
                                         lhs_dilation=(stride, stride),
                                         dimension_numbers=dn)
        return jax.nn.relu(y + b)

    x = pool(conv(x, *raw["conv1"], pad=1))
    x = pool(conv(x, *raw["conv2"], pad=1))
    x = pool(conv(x, *raw["conv3"], pad=1))
    x = tconv(x, *raw["tconv1"], stride=2)
    x = tconv(x, *raw["tconv2"], stride=2)
    x = tconv(x, *raw["tconv3"], stride=2)
    return jnp.transpose(x, (0, 3, 1, 2))


# ------------------------------------ main -----------------------------------

if __name__ == "__main__":
    key = jax.random.PRNGKey(0)
    kx, kp = jax.random.split(key)
    x = jax.random.normal(kx, (2, 3, 16, 16), jnp.float32)   # NCHW like PyTorch
    raw, packed = init_params(kp)

    fwd = jax.jit(model_forward)
    out = jax.block_until_ready(fwd(x, packed))
    assert out.shape == (2, 3, 20, 20), out.shape

    ref = jax.block_until_ready(ref_forward(x, raw))
    err = float(jnp.max(jnp.abs(out - ref)))
    # bf16 MXU operands with f32 accumulation + f32 epilogue -> small error.
    assert jnp.allclose(out, ref, atol=2e-2, rtol=2e-2), err

    print("KERNEL_OK")
</pallas_src>

<mosaic_0001>
module attributes {stable_mosaic.version = 11 : i64} {
  func.func @_mm_bias_relu_kernel(%arg0: i32, %arg1: memref<128x128xbf16, #tpu.memory_space<vmem>>, %arg2: memref<128x128xbf16, #tpu.memory_space<vmem>>, %arg3: memref<1x128xf32, #tpu.memory_space<vmem>>, %arg4: memref<128x32xf32, #tpu.memory_space<vmem>>) attributes {dimension_semantics = [#tpu.dimension_semantics<parallel>], iteration_bounds = array<i64: 1>, scalar_prefetch = 0 : i64, scratch_operands = 0 : i64, tpu.core_type = #tpu.core_type<tc>, window_params = [{transform_indices = @transform_0, window_bounds = array<i64: 128, 128>}, {pipeline_mode = #tpu.pipeline_mode<synchronous>, transform_indices = @transform_1, window_bounds = array<i64: 128, 128>}, {pipeline_mode = #tpu.pipeline_mode<synchronous>, transform_indices = @transform_2, window_bounds = array<i64: 1, 128>}, {transform_indices = @transform_3, window_bounds = array<i64: 128, 32>}]} {
    %c0 = arith.constant 0 : index
    %c0_0 = arith.constant 0 : index
    %0 = vector.load %arg1[%c0, %c0_0] : memref<128x128xbf16, #tpu.memory_space<vmem>>, vector<128x128xbf16>
    %c0_1 = arith.constant 0 : index
    %c0_2 = arith.constant 0 : index
    %1 = vector.load %arg2[%c0_1, %c0_2] : memref<128x128xbf16, #tpu.memory_space<vmem>>, vector<128x128xbf16>
    %cst = arith.constant dense<0.000000e+00> : vector<128x128xf32>
    %2 = tpu.matmul %0, %1, %cst {dimension_numbers = #tpu.dot_dimension_numbers<[1], [0], [0], [1], [0, 0, 1, 1], [], []>} : vector<128x128xbf16>, vector<128x128xbf16>, vector<128x128xf32> -> vector<128x128xf32>
    %c0_3 = arith.constant 0 : index
    %c0_4 = arith.constant 0 : index
    %3 = vector.load %arg3[%c0_3, %c0_4] : memref<1x128xf32, #tpu.memory_space<vmem>>, vector<1x128xf32>
    %4 = vector.broadcast %3 : vector<1x128xf32> to vector<128x128xf32>
    %5 = arith.addf %2, %4 : vector<128x128xf32>
    %cst_5 = arith.constant 0.000000e+00 : f32
    %6 = vector.broadcast %cst_5 : f32 to vector<128x128xf32>
    %7 = arith.maximumf %5, %6 : vector<128x128xf32>
    %8 = vector.extract_strided_slice %7 {offsets = [0, 0], sizes = [128, 32], strides = [1, 1]} : vector<128x128xf32> to vector<128x32xf32>
    %9 = vector.extract_strided_slice %7 {offsets = [0, 32], sizes = [128, 32], strides = [1, 1]} : vector<128x128xf32> to vector<128x32xf32>
    %10 = arith.maximumf %8, %9 : vector<128x32xf32>
    %11 = vector.extract_strided_slice %7 {offsets = [0, 64], sizes = [128, 32], strides = [1, 1]} : vector<128x128xf32> to vector<128x32xf32>
    %12 = arith.maximumf %10, %11 : vector<128x32xf32>
    %13 = vector.extract_strided_slice %7 {offsets = [0, 96], sizes = [128, 32], strides = [1, 1]} : vector<128x128xf32> to vector<128x32xf32>
    %14 = arith.maximumf %12, %13 : vector<128x32xf32>
    %c0_6 = arith.constant 0 : index
    %c0_7 = arith.constant 0 : index
    %15 = vector.load %arg4[%c0_6, %c0_7] : memref<128x32xf32, #tpu.memory_space<vmem>>, vector<128x32xf32>
    tpu.vector_store %arg4[%c0_6, %c0_7], %14 {strides = array<i32>} : memref<128x32xf32, #tpu.memory_space<vmem>>, vector<128x32xf32>,
    return
  }
  func.func @transform_0(%arg0: i32) -> (i32, i32) {
    %c0_i32 = arith.constant 0 : i32
    %c0_i32_0 = arith.constant 0 : i32
    return %arg0, %c0_i32 : i32, i32
  }
  func.func @transform_1(%arg0: i32) -> (i32, i32) {
    %c0_i32 = arith.constant 0 : i32
    %c0_i32_0 = arith.constant 0 : i32
    %c0_i32_1 = arith.constant 0 : i32
    return %c0_i32, %c0_i32_0 : i32, i32
  }
  func.func @transform_2(%arg0: i32) -> (i32, i32) {
    %c0_i32 = arith.constant 0 : i32
    %c0_i32_0 = arith.constant 0 : i32
    %c0_i32_1 = arith.constant 0 : i32
    return %c0_i32, %c0_i32_0 : i32, i32
  }
  func.func @transform_3(%arg0: i32) -> (i32, i32) {
    %c0_i32 = arith.constant 0 : i32
    %c0_i32_0 = arith.constant 0 : i32
    return %arg0, %c0_i32 : i32, i32
  }
}

module attributes {stable_mosaic.version = 11 : i64} {
  func.func @_mm_bias_relu_kernel(%arg0: i32, %arg1: memref<32x512xbf16, #tpu.memory_space<vmem>>, %arg2: memref<512x256xbf16, #tpu.memory_space<vmem>>, %arg3: memref<1x256xf32, #tpu.memory_space<vmem>>, %arg4: memref<32x64xf32, #tpu.memory_space<vmem>>) attributes {dimension_semantics = [#tpu.dimension_semantics<parallel>], iteration_bounds = array<i64: 1>, scalar_prefetch = 0 : i64, scratch_operands = 0 : i64, tpu.core_type = #tpu.core_type<tc>, window_params = [{transform_indices = @transform_0, window_bounds = array<i64: 32, 512>}, {pipeline_mode = #tpu.pipeline_mode<synchronous>, transform_indices = @transform_1, window_bounds = array<i64: 512, 256>}, {pipeline_mode = #tpu.pipeline_mode<synchronous>, transform_indices = @transform_2, window_bounds = array<i64: 1, 256>}, {transform_indices = @transform_3, window_bounds = array<i64: 32, 64>}]} {
    %c0 = arith.constant 0 : index
    %c0_0 = arith.constant 0 : index
    %0 = vector.load %arg1[%c0, %c0_0] : memref<32x512xbf16, #tpu.memory_space<vmem>>, vector<32x512xbf16>
    %c0_1 = arith.constant 0 : index
    %c0_2 = arith.constant 0 : index
    %1 = vector.load %arg2[%c0_1, %c0_2] : memref<512x256xbf16, #tpu.memory_space<vmem>>, vector<512x256xbf16>
    %cst = arith.constant dense<0.000000e+00> : vector<32x256xf32>
    %2 = tpu.matmul %0, %1, %cst {dimension_numbers = #tpu.dot_dimension_numbers<[1], [0], [0], [1], [0, 0, 1, 1], [], []>} : vector<32x512xbf16>, vector<512x256xbf16>, vector<32x256xf32> -> vector<32x256xf32>
    %c0_3 = arith.constant 0 : index
    %c0_4 = arith.constant 0 : index
    %3 = vector.load %arg3[%c0_3, %c0_4] : memref<1x256xf32, #tpu.memory_space<vmem>>, vector<1x256xf32>
    %4 = vector.broadcast %3 : vector<1x256xf32> to vector<32x256xf32>
    %5 = arith.addf %2, %4 : vector<32x256xf32>
    %cst_5 = arith.constant 0.000000e+00 : f32
    %6 = vector.broadcast %cst_5 : f32 to vector<32x256xf32>
    %7 = arith.maximumf %5, %6 : vector<32x256xf32>
    %8 = vector.extract_strided_slice %7 {offsets = [0, 0], sizes = [32, 64], strides = [1, 1]} : vector<32x256xf32> to vector<32x64xf32>
    %9 = vector.extract_strided_slice %7 {offsets = [0, 64], sizes = [32, 64], strides = [1, 1]} : vector<32x256xf32> to vector<32x64xf32>
    %10 = arith.maximumf %8, %9 : vector<32x64xf32>
    %11 = vector.extract_strided_slice %7 {offsets = [0, 128], sizes = [32, 64], strides = [1, 1]} : vector<32x256xf32> to vector<32x64xf32>
    %12 = arith.maximumf %10, %11 : vector<32x64xf32>
    %13 = vector.extract_strided_slice %7 {offsets = [0, 192], sizes = [32, 64], strides = [1, 1]} : vector<32x256xf32> to vector<32x64xf32>
    %14 = arith.maximumf %12, %13 : vector<32x64xf32>
    %c0_6 = arith.constant 0 : index
    %c0_7 = arith.constant 0 : index
    %15 = vector.load %arg4[%c0_6, %c0_7] : memref<32x64xf32, #tpu.memory_space<vmem>>, vector<32x64xf32>
    tpu.vector_store %arg4[%c0_6, %c0_7], %14 {strides = array<i32>} : memref<32x64xf32, #tpu.memory_space<vmem>>, vector<32x64xf32>,
    return
  }
  func.func @transform_0(%arg0: i32) -> (i32, i32) {
    %c0_i32 = arith.constant 0 : i32
    %c0_i32_0 = arith.constant 0 : i32
    return %arg0, %c0_i32 : i32, i32
  }
  func.func @transform_1(%arg0: i32) -> (i32, i32) {
    %c0_i32 = arith.constant 0 : i32
    %c0_i32_0 = arith.constant 0 : i32
    %c0_i32_1 = arith.constant 0 : i32
    return %c0_i32, %c0_i32_0 : i32, i32
  }
  func.func @transform_2(%arg0: i32) -> (i32, i32) {
    %c0_i32 = arith.constant 0 : i32
    %c0_i32_0 = arith.constant 0 : i32
    %c0_i32_1 = arith.constant 0 : i32
    return %c0_i32, %c0_i32_0 : i32, i32
  }
  func.func @transform_3(%arg0: i32) -> (i32, i32) {
    %c0_i32 = arith.constant 0 : i32
    %c0_i32_0 = arith.constant 0 : i32
    return %arg0, %c0_i32 : i32, i32
  }
}

module attributes {stable_mosaic.version = 11 : i64} {
  func.func @_mm_bias_relu_kernel(%arg0: i32, %arg1: memref<8x1024xbf16, #tpu.memory_space<vmem>>, %arg2: memref<1024x512xbf16, #tpu.memory_space<vmem>>, %arg3: memref<1x512xf32, #tpu.memory_space<vmem>>, %arg4: memref<8x128xf32, #tpu.memory_space<vmem>>) attributes {dimension_semantics = [#tpu.dimension_semantics<parallel>], iteration_bounds = array<i64: 1>, scalar_prefetch = 0 : i64, scratch_operands = 0 : i64, tpu.core_type = #tpu.core_type<tc>, window_params = [{transform_indices = @transform_0, window_bounds = array<i64: 8, 1024>}, {pipeline_mode = #tpu.pipeline_mode<synchronous>, transform_indices = @transform_1, window_bounds = array<i64: 1024, 512>}, {pipeline_mode = #tpu.pipeline_mode<synchronous>, transform_indices = @transform_2, window_bounds = array<i64: 1, 512>}, {transform_indices = @transform_3, window_bounds = array<i64: 8, 128>}]} {
    %c0 = arith.constant 0 : index
    %c0_0 = arith.constant 0 : index
    %0 = vector.load %arg1[%c0, %c0_0] : memref<8x1024xbf16, #tpu.memory_space<vmem>>, vector<8x1024xbf16>
    %c0_1 = arith.constant 0 : index
    %c0_2 = arith.constant 0 : index
    %1 = vector.load %arg2[%c0_1, %c0_2] : memref<1024x512xbf16, #tpu.memory_space<vmem>>, vector<1024x512xbf16>
    %cst = arith.constant dense<0.000000e+00> : vector<8x512xf32>
    %2 = tpu.matmul %0, %1, %cst {dimension_numbers = #tpu.dot_dimension_numbers<[1], [0], [0], [1], [0, 0, 1, 1], [], []>} : vector<8x1024xbf16>, vector<1024x512xbf16>, vector<8x512xf32> -> vector<8x512xf32>
    %c0_3 = arith.constant 0 : index
    %c0_4 = arith.constant 0 : index
    %3 = vector.load %arg3[%c0_3, %c0_4] : memref<1x512xf32, #tpu.memory_space<vmem>>, vector<1x512xf32>
    %4 = vector.broadcast %3 : vector<1x512xf32> to vector<8x512xf32>
    %5 = arith.addf %2, %4 : vector<8x512xf32>
    %cst_5 = arith.constant 0.000000e+00 : f32
    %6 = vector.broadcast %cst_5 : f32 to vector<8x512xf32>
    %7 = arith.maximumf %5, %6 : vector<8x512xf32>
    %8 = vector.extract_strided_slice %7 {offsets = [0, 0], sizes = [8, 128], strides = [1, 1]} : vector<8x512xf32> to vector<8x128xf32>
    %9 = vector.extract_strided_slice %7 {offsets = [0, 128], sizes = [8, 128], strides = [1, 1]} : vector<8x512xf32> to vector<8x128xf32>
    %10 = arith.maximumf %8, %9 : vector<8x128xf32>
    %11 = vector.extract_strided_slice %7 {offsets = [0, 256], sizes = [8, 128], strides = [1, 1]} : vector<8x512xf32> to vector<8x128xf32>
    %12 = arith.maximumf %10, %11 : vector<8x128xf32>
    %13 = vector.extract_strided_slice %7 {offsets = [0, 384], sizes = [8, 128], strides = [1, 1]} : vector<8x512xf32> to vector<8x128xf32>
    %14 = arith.maximumf %12, %13 : vector<8x128xf32>
    %c0_6 = arith.constant 0 : index
    %c0_7 = arith.constant 0 : index
    %15 = vector.load %arg4[%c0_6, %c0_7] : memref<8x128xf32, #tpu.memory_space<vmem>>, vector<8x128xf32>
    tpu.vector_store %arg4[%c0_6, %c0_7], %14 {strides = array<i32>} : memref<8x128xf32, #tpu.memory_space<vmem>>, vector<8x128xf32>,
    return
  }
  func.func @transform_0(%arg0: i32) -> (i32, i32) {
    %c0_i32 = arith.constant 0 : i32
    %c0_i32_0 = arith.constant 0 : i32
    return %arg0, %c0_i32 : i32, i32
  }
  func.func @transform_1(%arg0: i32) -> (i32, i32) {
    %c0_i32 = arith.constant 0 : i32
    %c0_i32_0 = arith.constant 0 : i32
    %c0_i32_1 = arith.constant 0 : i32
    return %c0_i32, %c0_i32_0 : i32, i32
  }
  func.func @transform_2(%arg0: i32) -> (i32, i32) {
    %c0_i32 = arith.constant 0 : i32
    %c0_i32_0 = arith.constant 0 : i32
    %c0_i32_1 = arith.constant 0 : i32
    return %c0_i32, %c0_i32_0 : i32, i32
  }
  func.func @transform_3(%arg0: i32) -> (i32, i32) {
    %c0_i32 = arith.constant 0 : i32
    %c0_i32_0 = arith.constant 0 : i32
    return %arg0, %c0_i32 : i32, i32
  }
}

module attributes {stable_mosaic.version = 11 : i64} {
  func.func @_mm_bias_relu_kernel(%arg0: i32, %arg1: memref<24x512xbf16, #tpu.memory_space<vmem>>, %arg2: memref<512x256xbf16, #tpu.memory_space<vmem>>, %arg3: memref<1x256xf32, #tpu.memory_space<vmem>>, %arg4: memref<24x256xf32, #tpu.memory_space<vmem>>) attributes {dimension_semantics = [#tpu.dimension_semantics<parallel>], iteration_bounds = array<i64: 1>, scalar_prefetch = 0 : i64, scratch_operands = 0 : i64, tpu.core_type = #tpu.core_type<tc>, window_params = [{transform_indices = @transform_0, window_bounds = array<i64: 24, 512>}, {pipeline_mode = #tpu.pipeline_mode<synchronous>, transform_indices = @transform_1, window_bounds = array<i64: 512, 256>}, {pipeline_mode = #tpu.pipeline_mode<synchronous>, transform_indices = @transform_2, window_bounds = array<i64: 1, 256>}, {transform_indices = @transform_3, window_bounds = array<i64: 24, 256>}]} {
    %c0 = arith.constant 0 : index
    %c0_0 = arith.constant 0 : index
    %0 = vector.load %arg1[%c0, %c0_0] : memref<24x512xbf16, #tpu.memory_space<vmem>>, vector<24x512xbf16>
    %c0_1 = arith.constant 0 : index
    %c0_2 = arith.constant 0 : index
    %1 = vector.load %arg2[%c0_1, %c0_2] : memref<512x256xbf16, #tpu.memory_space<vmem>>, vector<512x256xbf16>
    %cst = arith.constant dense<0.000000e+00> : vector<24x256xf32>
    %2 = tpu.matmul %0, %1, %cst {dimension_numbers = #tpu.dot_dimension_numbers<[1], [0], [0], [1], [0, 0, 1, 1], [], []>} : vector<24x512xbf16>, vector<512x256xbf16>, vector<24x256xf32> -> vector<24x256xf32>
    %c0_3 = arith.constant 0 : index
    %c0_4 = arith.constant 0 : index
    %3 = vector.load %arg3[%c0_3, %c0_4] : memref<1x256xf32, #tpu.memory_space<vmem>>, vector<1x256xf32>
    %4 = vector.broadcast %3 : vector<1x256xf32> to vector<24x256xf32>
    %5 = arith.addf %2, %4 : vector<24x256xf32>
    %cst_5 = arith.constant 0.000000e+00 : f32
    %6 = vector.broadcast %cst_5 : f32 to vector<24x256xf32>
    %7 = arith.maximumf %5, %6 : vector<24x256xf32>
    %c0_6 = arith.constant 0 : index
    %c0_7 = arith.constant 0 : index
    %8 = vector.load %arg4[%c0_6, %c0_7] : memref<24x256xf32, #tpu.memory_space<vmem>>, vector<24x256xf32>
    tpu.vector_store %arg4[%c0_6, %c0_7], %7 {strides = array<i32>} : memref<24x256xf32, #tpu.memory_space<vmem>>, vector<24x256xf32>,
    return
  }
  func.func @transform_0(%arg0: i32) -> (i32, i32) {
    %c0_i32 = arith.constant 0 : i32
    %c0_i32_0 = arith.constant 0 : i32
    return %arg0, %c0_i32 : i32, i32
  }
  func.func @transform_1(%arg0: i32) -> (i32, i32) {
    %c0_i32 = arith.constant 0 : i32
    %c0_i32_0 = arith.constant 0 : i32
    %c0_i32_1 = arith.constant 0 : i32
    return %c0_i32, %c0_i32_0 : i32, i32
  }
  func.func @transform_2(%arg0: i32) -> (i32, i32) {
    %c0_i32 = arith.constant 0 : i32
    %c0_i32_0 = arith.constant 0 : i32
    %c0_i32_1 = arith.constant 0 : i32
    return %c0_i32, %c0_i32_0 : i32, i32
  }
  func.func @transform_3(%arg0: i32) -> (i32, i32) {
    %c0_i32 = arith.constant 0 : i32
    %c0_i32_0 = arith.constant 0 : i32
    return %arg0, %c0_i32 : i32, i32
  }
}

module attributes {stable_mosaic.version = 11 : i64} {
  func.func @_mm_bias_relu_kernel(%arg0: i32, %arg1: memref<56x128xbf16, #tpu.memory_space<vmem>>, %arg2: memref<128x128xbf16, #tpu.memory_space<vmem>>, %arg3: memref<1x128xf32, #tpu.memory_space<vmem>>, %arg4: memref<56x128xf32, #tpu.memory_space<vmem>>) attributes {dimension_semantics = [#tpu.dimension_semantics<parallel>], iteration_bounds = array<i64: 1>, scalar_prefetch = 0 : i64, scratch_operands = 0 : i64, tpu.core_type = #tpu.core_type<tc>, window_params = [{transform_indices = @transform_0, window_bounds = array<i64: 56, 128>}, {pipeline_mode = #tpu.pipeline_mode<synchronous>, transform_indices = @transform_1, window_bounds = array<i64: 128, 128>}, {pipeline_mode = #tpu.pipeline_mode<synchronous>, transform_indices = @transform_2, window_bounds = array<i64: 1, 128>}, {transform_indices = @transform_3, window_bounds = array<i64: 56, 128>}]} {
    %c0 = arith.constant 0 : index
    %c0_0 = arith.constant 0 : index
    %0 = vector.load %arg1[%c0, %c0_0] : memref<56x128xbf16, #tpu.memory_space<vmem>>, vector<56x128xbf16>
    %c0_1 = arith.constant 0 : index
    %c0_2 = arith.constant 0 : index
    %1 = vector.load %arg2[%c0_1, %c0_2] : memref<128x128xbf16, #tpu.memory_space<vmem>>, vector<128x128xbf16>
    %cst = arith.constant dense<0.000000e+00> : vector<56x128xf32>
    %2 = tpu.matmul %0, %1, %cst {dimension_numbers = #tpu.dot_dimension_numbers<[1], [0], [0], [1], [0, 0, 1, 1], [], []>} : vector<56x128xbf16>, vector<128x128xbf16>, vector<56x128xf32> -> vector<56x128xf32>
    %c0_3 = arith.constant 0 : index
    %c0_4 = arith.constant 0 : index
    %3 = vector.load %arg3[%c0_3, %c0_4] : memref<1x128xf32, #tpu.memory_space<vmem>>, vector<1x128xf32>
    %4 = vector.broadcast %3 : vector<1x128xf32> to vector<56x128xf32>
    %5 = arith.addf %2, %4 : vector<56x128xf32>
    %cst_5 = arith.constant 0.000000e+00 : f32
    %6 = vector.broadcast %cst_5 : f32 to vector<56x128xf32>
    %7 = arith.maximumf %5, %6 : vector<56x128xf32>
    %c0_6 = arith.constant 0 : index
    %c0_7 = arith.constant 0 : index
    %8 = vector.load %arg4[%c0_6, %c0_7] : memref<56x128xf32, #tpu.memory_space<vmem>>, vector<56x128xf32>
    tpu.vector_store %arg4[%c0_6, %c0_7], %7 {strides = array<i32>} : memref<56x128xf32, #tpu.memory_space<vmem>>, vector<56x128xf32>,
    return
  }
  func.func @transform_0(%arg0: i32) -> (i32, i32) {
    %c0_i32 = arith.constant 0 : i32
    %c0_i32_0 = arith.constant 0 : i32
    return %arg0, %c0_i32 : i32, i32
  }
  func.func @transform_1(%arg0: i32) -> (i32, i32) {
    %c0_i32 = arith.constant 0 : i32
    %c0_i32_0 = arith.constant 0 : i32
    %c0_i32_1 = arith.constant 0 : i32
    return %c0_i32, %c0_i32_0 : i32, i32
  }
  func.func @transform_2(%arg0: i32) -> (i32, i32) {
    %c0_i32 = arith.constant 0 : i32
    %c0_i32_0 = arith.constant 0 : i32
    %c0_i32_1 = arith.constant 0 : i32
    return %c0_i32, %c0_i32_0 : i32, i32
  }
  func.func @transform_3(%arg0: i32) -> (i32, i32) {
    %c0_i32 = arith.constant 0 : i32
    %c0_i32_0 = arith.constant 0 : i32
    return %arg0, %c0_i32 : i32, i32
  }
}

module attributes {stable_mosaic.version = 11 : i64} {
  func.func @_mm_bias_relu_kernel(%arg0: i32, %arg1: memref<128x128xbf16, #tpu.memory_space<vmem>>, %arg2: memref<128x128xbf16, #tpu.memory_space<vmem>>, %arg3: memref<1x128xf32, #tpu.memory_space<vmem>>, %arg4: memref<128x128xf32, #tpu.memory_space<vmem>>) attributes {dimension_semantics = [#tpu.dimension_semantics<parallel>], iteration_bounds = array<i64: 2>, scalar_prefetch = 0 : i64, scratch_operands = 0 : i64, tpu.core_type = #tpu.core_type<tc>, window_params = [{transform_indices = @transform_0, window_bounds = array<i64: 128, 128>}, {pipeline_mode = #tpu.pipeline_mode<synchronous>, transform_indices = @transform_1, window_bounds = array<i64: 128, 128>}, {pipeline_mode = #tpu.pipeline_mode<synchronous>, transform_indices = @transform_2, window_bounds = array<i64: 1, 128>}, {transform_indices = @transform_3, window_bounds = array<i64: 128, 128>}]} {
    %c0 = arith.constant 0 : index
    %c0_0 = arith.constant 0 : index
    %0 = vector.load %arg1[%c0, %c0_0] : memref<128x128xbf16, #tpu.memory_space<vmem>>, vector<128x128xbf16>
    %c0_1 = arith.constant 0 : index
    %c0_2 = arith.constant 0 : index
    %1 = vector.load %arg2[%c0_1, %c0_2] : memref<128x128xbf16, #tpu.memory_space<vmem>>, vector<128x128xbf16>
    %cst = arith.constant dense<0.000000e+00> : vector<128x128xf32>
    %2 = tpu.matmul %0, %1, %cst {dimension_numbers = #tpu.dot_dimension_numbers<[1], [0], [0], [1], [0, 0, 1, 1], [], []>} : vector<128x128xbf16>, vector<128x128xbf16>, vector<128x128xf32> -> vector<128x128xf32>
    %c0_3 = arith.constant 0 : index
    %c0_4 = arith.constant 0 : index
    %3 = vector.load %arg3[%c0_3, %c0_4] : memref<1x128xf32, #tpu.memory_space<vmem>>, vector<1x128xf32>
    %4 = vector.broadcast %3 : vector<1x128xf32> to vector<128x128xf32>
    %5 = arith.addf %2, %4 : vector<128x128xf32>
    %cst_5 = arith.constant 0.000000e+00 : f32
    %6 = vector.broadcast %cst_5 : f32 to vector<128x128xf32>
    %7 = arith.maximumf %5, %6 : vector<128x128xf32>
    %c0_6 = arith.constant 0 : index
    %c0_7 = arith.constant 0 : index
    %8 = vector.load %arg4[%c0_6, %c0_7] : memref<128x128xf32, #tpu.memory_space<vmem>>, vector<128x128xf32>
    tpu.vector_store %arg4[%c0_6, %c0_7], %7 {strides = array<i32>} : memref<128x128xf32, #tpu.memory_space<vmem>>, vector<128x128xf32>,
    return
  }
  func.func @transform_0(%arg0: i32) -> (i32, i32) {
    %c0_i32 = arith.constant 0 : i32
    %c0_i32_0 = arith.constant 0 : i32
    return %arg0, %c0_i32 : i32, i32
  }
  func.func @transform_1(%arg0: i32) -> (i32, i32) {
    %c0_i32 = arith.constant 0 : i32
    %c0_i32_0 = arith.constant 0 : i32
    %c0_i32_1 = arith.constant 0 : i32
    return %c0_i32, %c0_i32_0 : i32, i32
  }
  func.func @transform_2(%arg0: i32) -> (i32, i32) {
    %c0_i32 = arith.constant 0 : i32
    %c0_i32_0 = arith.constant 0 : i32
    %c0_i32_1 = arith.constant 0 : i32
    return %c0_i32, %c0_i32_0 : i32, i32
  }
  func.func @transform_3(%arg0: i32) -> (i32, i32) {
    %c0_i32 = arith.constant 0 : i32
    %c0_i32_0 = arith.constant 0 : i32
    return %arg0, %c0_i32 : i32, i32
  }
}

</mosaic_0001>

<bundles_post_ra>
// kernel: model_forward.6
= control target key start
LH: loop header
LB: loop body
LE: loop exit
PB: predicated region body
PF: predicated region fallthrough
CT: control target
= control target key end

     0   :  { %s594_s18 = smov 32   ;;  %vm471_vm0 = vcmask 261120   ;;  %s892_s1 = inlined_call_operand.vmem [shape: bf16[128,128], index: 1, kind: input, shape index: {}]   ;;  %s893_s0 = inlined_call_operand.vmem [shape: bf16[128,128], index: 0, kind: input, shape index: {}]   ;;  %s894_s2 = inlined_call_operand.vmem [shape: f32[1,128], index: 2, kind: input, shape index: {}]   ;;  %s895_s3 = inlined_call_operand.vmem [shape: f32[128,32], index: 3, kind: output, shape index: {}]  }
   0x1   :  { %v576_v0 = vld [vmem:[%s892_s1 + $0x38] sm:$0xff]   ;;  %v577_v1 = vld [vmem:[%s892_s1 + $0x30] sm:$0xff]   ;;  %v578_v2 = vld [vmem:[%s892_s1 + $0x28] sm:$0xff]  }
   0x2   :  { %525 = vmatprep.subr.bf16.mxu0 %v576_v0  ;;  %557 = vmatprep.subr.bf16.mxu1 %v576_v0  ;;  %v579_v3 = vld [vmem:[%s892_s1 + $0x20] sm:$0xff]   ;;  %v580_v6 = vld [vmem:[%s892_s1 + $0x18] sm:$0xff]   ;;  %v581_v7 = vld [vmem:[%s892_s1 + $0x10] sm:$0xff]  }
   0x3   :  { %526 = vmatpush3.bf16.msra.mxu0 %v576_v0  ;;  %565 = vmatpush3.bf16.msra.mxu1 %v576_v0  ;;  %v584_v4 = vld [vmem:[%s893_s0] sm:$0xff]   ;;  %v582_v8 = vld [vmem:[%s892_s1 + $0x8] sm:$0xff]   ;;  %v588_v12 = vld [vmem:[%s893_s0 + $0x10] sm:$0xff]  }
   0x4   :  { %527 = vmatprep.subr.bf16.mxu0 %v577_v1  ;;  %558 = vmatprep.subr.bf16.mxu1 %v577_v1  ;;  %v585_v5 = vld [vmem:[%s893_s0 + $0x20] sm:$0xff]   ;;  %v586_v10 = vld [vmem:[%s893_s0 + $0x8] sm:$0xff]   ;;  %v590_v13 = vld [vmem:[%s893_s0 + $0x30] sm:$0xff]  }
   0x5   :  { %541 = vmatprep.mubr.bf16.mxu0 %v584_v4  ;;  %549 = vmatprep.mubr.bf16.mxu1 %v585_v5  ;;  %v583_v9 = vld [vmem:[%s892_s1] sm:$0xff]   ;;  %v587_v11 = vld [vmem:[%s893_s0 + $0x28] sm:$0xff]   ;;  %v589_v14 = vld [vmem:[%s893_s0 + $0x18] sm:$0xff]  }
   0x6   :  { %v591_v15 = vld [vmem:[%s893_s0 + $0x38] sm:$0xff]   ;;  %v666_v16 = vld [vmem:[%s894_s2] ss:$0 sm:$0xff]  ;;  %s592_s0 = smov 96   ;;  %s593_s2 = smov 64  }
   0x7   :  { %528 = vmatpush3.bf16.msra.mxu0 %v577_v1  ;;  %566 = vmatpush3.bf16.msra.mxu1 %v577_v1 }
   0x8   :  { %529 = vmatprep.subr.bf16.mxu0 %v578_v2  ;;  %559 = vmatprep.subr.bf16.mxu1 %v578_v2 }
   0xb   :  { %530 = vmatpush3.bf16.msra.mxu0 %v578_v2  ;;  %567 = vmatpush3.bf16.msra.mxu1 %v578_v2 }
   0xc   :  { %531 = vmatprep.subr.bf16.mxu0 %v579_v3  ;;  %560 = vmatprep.subr.bf16.mxu1 %v579_v3 }
   0xf   :  { %532 = vmatpush3.bf16.msra.mxu0 %v579_v3  ;;  %568 = vmatpush3.bf16.msra.mxu1 %v579_v3 }
  0x10   :  { %533 = vmatprep.subr.bf16.mxu0 %v580_v6  ;;  %561 = vmatprep.subr.bf16.mxu1 %v580_v6 }
  0x13   :  { %534 = vmatpush3.bf16.msra.mxu0 %v580_v6  ;;  %569 = vmatpush3.bf16.msra.mxu1 %v580_v6 }
  0x14   :  { %535 = vmatprep.subr.bf16.mxu0 %v581_v7  ;;  %562 = vmatprep.subr.bf16.mxu1 %v581_v7 }
  0x17   :  { %536 = vmatpush3.bf16.msra.mxu0 %v581_v7  ;;  %570 = vmatpush3.bf16.msra.mxu1 %v581_v7 }
  0x18   :  { %537 = vmatprep.subr.bf16.mxu0 %v582_v8  ;;  %563 = vmatprep.subr.bf16.mxu1 %v582_v8 }
  0x1b   :  { %538 = vmatpush3.bf16.msra.mxu0 %v582_v8  ;;  %571 = vmatpush3.bf16.msra.mxu1 %v582_v8 }
  0x1c   :  { %539 = vmatprep.subr.bf16.mxu0 %v583_v9  ;;  %564 = vmatprep.subr.bf16.mxu1 %v583_v9 }
  0x1f   :  { %540 = vmatpush3.bf16.msra.mxu0 %v583_v9  ;;  %572 = vmatpush3.bf16.msra.mxu1 %v583_v9 }
  0x22   :  { %542 = vmatmul.mubr.bf16.vlgmr.msra.gmra.mxu0 %v586_v10  ;;  %550 = vmatmul.mubr.bf16.vlgmr.msra.gmra.mxu1 %v587_v11 }
  0x23   :  { %545 = vmatprep.mubr.bf16.mxu0 %v588_v12  ;;  %553 = vmatprep.mubr.bf16.mxu1 %v590_v13 }
  0x2a   :  { %546 = vmatmul.mubr.bf16.gmra.mxu0 %v589_v14  ;;  %554 = vmatmul.mubr.bf16.gmra.mxu1 %v591_v15 }
  0xe2   :  { %v543_v17 = vpop.f32.mrf.mxu0  ;;  %v551_v18 = vpop.f32.mrf.mxu1 }
  0xe3   :  { %v193_v19 = vadd.f32 %v543_v17, %v666_v16  ;;  %v225_v20 = vadd.f32 %v551_v18, %v666_v16 }
  0xe4   :  { %v184_v21 = vpop.f32.mrf.mxu0  ;;  %v216_v22 = vpop.f32.mrf.mxu1 }
  0xe5   :  { %v670_v23 = vmax.f32 %v193_v19, 0.0  ;;  %v672_v24 = vmax.f32 %v225_v20, 0.0  ;;  %v185_v31 = vadd.f32 %v666_v16, %v184_v21  ;;  %v217_v33 = vadd.f32 %v666_v16, %v216_v22 }
  0xe6   :  { %v544_v25 = vpop.f32.mrf.mxu0  ;;  %v552_v26 = vpop.f32.mrf.mxu1 }
  0xe7   :  { %v196_v27 = vadd.f32 %v544_v25, %v666_v16  ;;  %299 = vrot.lane.b32.xlu0 %v672_v24, %s592_s0  ;;  %283 = vrot.lane.b32.xlu1 %v670_v23, %s592_s0  ;;  %v228_v29 = vadd.f32 %v552_v26, %v666_v16  ;;  %v701_v32 = vmax.f32 %v185_v31, 0.0  ;;  %v708_v35 = vmax.f32 %v217_v33, 0.0 }
  0xe8   :  { %v219_v34 = vpop.f32.mrf.mxu1  ;;  %v187_v37 = vpop.f32.mrf.mxu0 }
  0xe9   :  { %v679_v28 = vmax.f32 %v196_v27, 0.0  ;;  %v686_v30 = vmax.f32 %v228_v29, 0.0  ;;  %v220_v36 = vadd.f32 %v666_v16, %v219_v34  ;;  %v188_v38 = vadd.f32 %v666_v16, %v187_v37 }
  0xea   :  { %v547_v41 = vpop.f32.mrf.mxu0  ;;  %v555_v43 = vpop.f32.mrf.mxu1 }
  0xeb   :  { %347 = vrot.lane.b32.xlu0 %v670_v23, %s593_s2  ;;  %285 = vrot.lane.b32.xlu1 %v679_v28, %s592_s0  ;;  %v716_v39 = vmax.f32 %v220_v36, 0.0  ;;  %v722_v40 = vmax.f32 %v188_v38, 0.0  ;;  %v209_v46 = vadd.f32 %v547_v41, %v666_v16  ;;  %v241_v51 = vadd.f32 %v555_v43, %v666_v16 }
  0xec   :  { %v200_v42 = vpop.f32.mrf.mxu0  ;;  %v232_v45 = vpop.f32.mrf.mxu1 }
  0xed   :  { %v742_v49 = vmax.f32 %v209_v46, 0.0  ;;  %v752_v53 = vmax.f32 %v241_v51, 0.0  ;;  %v201_v56 = vadd.f32 %v666_v16, %v200_v42  ;;  %v233_v61 = vadd.f32 %v666_v16, %v232_v45 }
  0xee   :  { %v548_v44 = vpop.f32.mrf.mxu0  ;;  %v556_v48 = vpop.f32.mrf.mxu1 }
  0xef   :  { %363 = vrot.lane.b32.xlu0 %v672_v24, %s593_s2  ;;  %301 = vrot.lane.b32.xlu1 %v686_v30, %s592_s0  ;;  %v212_v47 = vadd.f32 %v548_v44, %v666_v16  ;;  %v244_v52 = vadd.f32 %v556_v48, %v666_v16  ;;  %v774_v59 = vmax.f32 %v201_v56, 0.0  ;;  %v784_v63 = vmax.f32 %v233_v61, 0.0 }
  0xf0   :  { %v203_v55 = vpop.f32.mrf.mxu0  ;;  %v235_v58 = vpop.f32.mrf.mxu1 }
  0xf1   :  { %v744_v50 = vmax.f32 %v212_v47, 0.0  ;;  %v754_v54 = vmax.f32 %v244_v52, 0.0  ;;  %v204_v57 = vadd.f32 %v666_v16, %v203_v55  ;;  %v236_v62 = vadd.f32 %v666_v16, %v235_v58 }
  0xf3   :  { %411 = vrot.lane.b32.xlu0 %v670_v23, %s594_s18  ;;  %349 = vrot.lane.b32.xlu1 %v679_v28, %s593_s2  ;;  %v776_v60 = vmax.f32 %v204_v57, 0.0  ;;  %v786_v0 = vmax.f32 %v236_v62, 0.0 }
  0xf7   :  { %427 = vrot.lane.b32.xlu0 %v672_v24, %s594_s18  ;;  %365 = vrot.lane.b32.xlu1 %v686_v30, %s593_s2 }
  0xfb   :  { %413 = vrot.lane.b32.xlu1 %v679_v28, %s594_s18  ;;  %279 = vrot.lane.b32.xlu0 %v701_v32, %s592_s0 }
  0xff   :  { %429 = vrot.lane.b32.xlu1 %v686_v30, %s594_s18  ;;  %295 = vrot.lane.b32.xlu0 %v708_v35, %s592_s0 }
 0x103   :  { %297 = vrot.lane.b32.xlu1 %v716_v39, %s592_s0  ;;  %343 = vrot.lane.b32.xlu0 %v701_v32, %s593_s2 }
 0x107   :  { %345 = vrot.lane.b32.xlu1 %v722_v40, %s593_s2  ;;  %359 = vrot.lane.b32.xlu0 %v708_v35, %s593_s2 }
 0x10b   :  { %361 = vrot.lane.b32.xlu1 %v716_v39, %s593_s2  ;;  %407 = vrot.lane.b32.xlu0 %v701_v32, %s594_s18 }
 0x10f   :  { %409 = vrot.lane.b32.xlu1 %v722_v40, %s594_s18  ;;  %423 = vrot.lane.b32.xlu0 %v708_v35, %s594_s18 }
 0x113   :  { %425 = vrot.lane.b32.xlu1 %v716_v39, %s594_s18  ;;  %281 = vrot.lane.b32.xlu0 %v722_v40, %s592_s0 }
 0x117   :  { %293 = vrot.lane.b32.xlu1 %v744_v50, %s592_s0  ;;  %291 = vrot.lane.b32.xlu0 %v742_v49, %s592_s0 }
 0x11b   :  { %309 = vrot.lane.b32.xlu1 %v754_v54, %s592_s0  ;;  %307 = vrot.lane.b32.xlu0 %v752_v53, %s592_s0 }
 0x11f   :  { %357 = vrot.lane.b32.xlu1 %v744_v50, %s593_s2  ;;  %355 = vrot.lane.b32.xlu0 %v742_v49, %s593_s2 }
 0x123   :  { %373 = vrot.lane.b32.xlu1 %v754_v54, %s593_s2  ;;  %371 = vrot.lane.b32.xlu0 %v752_v53, %s593_s2 }
 0x127   :  { %421 = vrot.lane.b32.xlu1 %v744_v50, %s594_s18  ;;  %419 = vrot.lane.b32.xlu0 %v742_v49, %s594_s18 }
 0x12b   :  { %289 = vrot.lane.b32.xlu1 %v776_v60, %s592_s0  ;;  %287 = vrot.lane.b32.xlu0 %v774_v59, %s592_s0 }
 0x12f   :  { %305 = vrot.lane.b32.xlu1 %v786_v0, %s592_s0  ;;  %303 = vrot.lane.b32.xlu0 %v784_v63, %s592_s0 }
 0x133   :  { %353 = vrot.lane.b32.xlu1 %v776_v60, %s593_s2  ;;  %351 = vrot.lane.b32.xlu0 %v774_v59, %s593_s2 }
 0x137   :  { %369 = vrot.lane.b32.xlu1 %v786_v0, %s593_s2  ;;  %367 = vrot.lane.b32.xlu0 %v784_v63, %s593_s2 }
 0x13b   :  { %417 = vrot.lane.b32.xlu1 %v776_v60, %s594_s18  ;;  %415 = vrot.lane.b32.xlu0 %v774_v59, %s594_s18 }
 0x13f   :  { %433 = vrot.lane.b32.xlu1 %v786_v0, %s594_s18  ;;  %431 = vrot.lane.b32.xlu0 %v784_v63, %s594_s18 }
 0x143   :  { %437 = vrot.lane.b32.xlu1 %v754_v54, %s594_s18  ;;  %435 = vrot.lane.b32.xlu0 %v752_v53, %s594_s18 }
 0x159   :  { %v300_v1 = vpop.permute.xlu0 %299  ;;  %v284_v2 = vpop.permute.xlu1 %283 }
 0x15a   :  { %v329_v7 = vmax.f32 %v670_v23, %v284_v2  ;;  %v337_v11 = vmax.f32 %v672_v24, %v300_v1 }
 0x15d   :  { %v348_v3 = vpop.permute.xlu0 %347  ;;  %v286_v4 = vpop.permute.xlu1 %285 }
 0x15e   :  { %v393_v8 = vmax.f32 %v329_v7, %v348_v3  ;;  %v330_v16 = vmax.f32 %v679_v28, %v286_v4 }
 0x161   :  { %v364_v5 = vpop.permute.xlu0 %363  ;;  %v302_v6 = vpop.permute.xlu1 %301 }
 0x162   :  { %v401_v13 = vmax.f32 %v337_v11, %v364_v5  ;;  %v338_v21 = vmax.f32 %v686_v30, %v302_v6 }
 0x165   :  { %v412_v9 = vpop.permute.xlu0 %411  ;;  %v350_v10 = vpop.permute.xlu1 %349 }
 0x166   :  { %v457_v12 = vmax.f32 %v393_v8, %v412_v9  ;;  %v394_v18 = vmax.f32 %v330_v16, %v350_v10 }
 0x168   :  { %474 = vst.msk [vmem:[%s895_s3 + $0x10] sm:$0xff] %vm471_vm0, %v457_v12 }
 0x169   :  { %v428_v14 = vpop.permute.xlu0 %427  ;;  %v366_v15 = vpop.permute.xlu1 %365 }
 0x16a   :  { %v465_v17 = vmax.f32 %v401_v13, %v428_v14  ;;  %v402_v23 = vmax.f32 %v338_v21, %v366_v15 }
 0x16c   :  { %482 = vst.msk [vmem:[%s895_s3 + $0x50] sm:$0xff] %vm471_vm0, %v465_v17 }
 0x16d   :  { %v414_v19 = vpop.permute.xlu1 %413  ;;  %v280_v20 = vpop.permute.xlu0 %279 }
 0x16e   :  { %v458_v22 = vmax.f32 %v394_v18, %v414_v19  ;;  %v327_v30 = vmax.f32 %v701_v32, %v280_v20 }
 0x170   :  { %475 = vst.msk [vmem:[%s895_s3 + $0x18] sm:$0xff] %vm471_vm0, %v458_v22 }
 0x171   :  { %v430_v24 = vpop.permute.xlu1 %429  ;;  %v296_v25 = vpop.permute.xlu0 %295 }
 0x172   :  { %v466_v26 = vmax.f32 %v402_v23, %v430_v24  ;;  %v335_v37 = vmax.f32 %v708_v35, %v296_v25 }
 0x174   :  { %483 = vst.msk [vmem:[%s895_s3 + $0x58] sm:$0xff] %vm471_vm0, %v466_v26 }
 0x175   :  { %v298_v27 = vpop.permute.xlu1 %297  ;;  %v344_v28 = vpop.permute.xlu0 %343 }
 0x176   :  { %v391_v33 = vmax.f32 %v327_v30, %v344_v28  ;;  %v336_v44 = vmax.f32 %v716_v39, %v298_v27 }
 0x179   :  { %v346_v29 = vpop.permute.xlu1 %345  ;;  %v360_v31 = vpop.permute.xlu0 %359 }
 0x17a   :  { %v399_v41 = vmax.f32 %v335_v37, %v360_v31 }
 0x17d   :  { %v362_v34 = vpop.permute.xlu1 %361  ;;  %v408_v36 = vpop.permute.xlu0 %407 }
 0x17e   :  { %v455_v38 = vmax.f32 %v391_v33, %v408_v36  ;;  %v400_v46 = vmax.f32 %v336_v44, %v362_v34 }
 0x180   :  { %472 = vst.msk [vmem:[%s895_s3] sm:$0xff] %vm471_vm0, %v455_v38 }
 0x181   :  { %v410_v42 = vpop.permute.xlu1 %409  ;;  %v424_v43 = vpop.permute.xlu0 %423 }
 0x182   :  { %v463_v45 = vmax.f32 %v399_v41, %v424_v43 }
 0x184   :  { %480 = vst.msk [vmem:[%s895_s3 + $0x40] sm:$0xff] %vm471_vm0, %v463_v45 }
 0x185   :  { %v426_v32 = vpop.permute.xlu1 %425  ;;  %v282_v35 = vpop.permute.xlu0 %281 }
 0x186   :  { %v464_v47 = vmax.f32 %v400_v46, %v426_v32  ;;  %v328_v48 = vmax.f32 %v722_v40, %v282_v35 }
 0x188   :  { %481 = vst.msk [vmem:[%s895_s3 + $0x48] sm:$0xff] %vm471_vm0, %v464_v47  ;;  %v392_v51 = vmax.f32 %v328_v48, %v346_v29 }
 0x189   :  { %v294_v52 = vpop.permute.xlu1 %293  ;;  %v292_v39 = vpop.permute.xlu0 %291 }
 0x18a   :  { %v456_v55 = vmax.f32 %v392_v51, %v410_v42  ;;  %v334_v1 = vmax.f32 %v744_v50, %v294_v52  ;;  %v333_v2 = vmax.f32 %v742_v49, %v292_v39 }
 0x18c   :  { %473 = vst.msk [vmem:[%s895_s3 + $0x8] sm:$0xff] %vm471_vm0, %v456_v55 }
 0x18d   :  { %v310_v56 = vpop.permute.xlu1 %309  ;;  %v308_v57 = vpop.permute.xlu0 %307 }
 0x191   :  { %v358_v58 = vpop.permute.xlu1 %357  ;;  %v356_v61 = vpop.permute.xlu0 %355 }
 0x192   :  { %v398_v3 = vmax.f32 %v334_v1, %v358_v58  ;;  %v397_v4 = vmax.f32 %v333_v2, %v356_v61 }
 0x195   :  { %v374_v62 = vpop.permute.xlu1 %373  ;;  %v372_v40 = vpop.permute.xlu0 %371 }
 0x199   :  { %v422_v5 = vpop.permute.xlu1 %421  ;;  %v420_v6 = vpop.permute.xlu0 %419 }
 0x19a   :  { %v462_v7 = vmax.f32 %v398_v3, %v422_v5  ;;  %v461_v8 = vmax.f32 %v397_v4, %v420_v6 }
 0x19c   :  { %479 = vst.msk [vmem:[%s895_s3 + $0x38] sm:$0xff] %vm471_vm0, %v462_v7  ;;  %478 = vst.msk [vmem:[%s895_s3 + $0x30] sm:$0xff] %vm471_vm0, %v461_v8 }
 0x19d   :  { %v290_v9 = vpop.permute.xlu1 %289  ;;  %v288_v50 = vpop.permute.xlu0 %287 }
 0x19e   :  { %v332_v15 = vmax.f32 %v776_v60, %v290_v9  ;;  %v331_v16 = vmax.f32 %v774_v59, %v288_v50 }
 0x1a1   :  { %v306_v10 = vpop.permute.xlu1 %305  ;;  %v304_v49 = vpop.permute.xlu0 %303 }
 0x1a2   :  { %v340_v21 = vmax.f32 %v786_v0, %v306_v10  ;;  %v339_v22 = vmax.f32 %v784_v63, %v304_v49  ;;  %v342_v0 = vmax.f32 %v754_v54, %v310_v56  ;;  %v341_v63 = vmax.f32 %v752_v53, %v308_v57 }
 0x1a4   :  { %v406_v29 = vmax.f32 %v342_v0, %v374_v62  ;;  %v405_v31 = vmax.f32 %v341_v63, %v372_v40 }
 0x1a5   :  { %v354_v11 = vpop.permute.xlu1 %353  ;;  %v352_v12 = vpop.permute.xlu0 %351 }
 0x1a6   :  { %v396_v17 = vmax.f32 %v332_v15, %v354_v11  ;;  %v395_v18 = vmax.f32 %v331_v16, %v352_v12 }
 0x1a9   :  { %v370_v13 = vpop.permute.xlu1 %369  ;;  %v368_v14 = vpop.permute.xlu0 %367 }
 0x1aa   :  { %v404_v25 = vmax.f32 %v340_v21, %v370_v13  ;;  %v403_v26 = vmax.f32 %v339_v22, %v368_v14 }
 0x1ad   :  { %v418_v19 = vpop.permute.xlu1 %417  ;;  %v416_v20 = vpop.permute.xlu0 %415 }
 0x1ae   :  { %v460_v23 = vmax.f32 %v396_v17, %v418_v19  ;;  %v459_v24 = vmax.f32 %v395_v18, %v416_v20 }
 0x1b0   :  { %477 = vst.msk [vmem:[%s895_s3 + $0x28] sm:$0xff] %vm471_vm0, %v460_v23  ;;  %476 = vst.msk [vmem:[%s895_s3 + $0x20] sm:$0xff] %vm471_vm0, %v459_v24 }
 0x1b1   :  { %v434_v59 = vpop.permute.xlu1 %433  ;;  %v432_v60 = vpop.permute.xlu0 %431 }
 0x1b2   :  { %v468_v27 = vmax.f32 %v404_v25, %v434_v59  ;;  %v467_v28 = vmax.f32 %v403_v26, %v432_v60 }
 0x1b4   :  { %485 = vst.msk [vmem:[%s895_s3 + $0x68] sm:$0xff] %vm471_vm0, %v468_v27  ;;  %484 = vst.msk [vmem:[%s895_s3 + $0x60] sm:$0xff] %vm471_vm0, %v467_v28 }
 0x1b5   :  { %v438_v30 = vpop.permute.xlu1 %437  ;;  %v436_v33 = vpop.permute.xlu0 %435 }
 0x1b6   :  { %v470_v34 = vmax.f32 %v406_v29, %v438_v30  ;;  %v469_v54 = vmax.f32 %v405_v31, %v436_v33 }
 0x1b8   :  { %487 = vst.msk [vmem:[%s895_s3 + $0x78] sm:$0xff] %vm471_vm0, %v470_v34  ;;  %486 = vst.msk [vmem:[%s895_s3 + $0x70] sm:$0xff] %vm471_vm0, %v469_v54 }

// kernel: model_forward.7
= control target key start
LH: loop header
LB: loop body
LE: loop exit
PB: predicated region body
PF: predicated region fallthrough
CT: control target
= control target key end

     0   :  { %vm616_vm0 = vcmask 523264   ;;  %s1070_s1 = inlined_call_operand.vmem [shape: bf16[512,256], index: 1, kind: input, shape index: {}]   ;;  %s1071_s0 = inlined_call_operand.vmem [shape: bf16[32,512], index: 0, kind: input, shape index: {}]   ;;  %s1072_s2 = inlined_call_operand.vmem [shape: f32[1,256], index: 2, kind: input, shape index: {}]   ;;  %s1073_s3 = inlined_call_operand.vmem [shape: f32[32,64], index: 3, kind: output, shape index: {}]  }
   0x1   :  { %v698_v0 = vld [vmem:[%s1070_s1 + $0x74] ss:$8 sps:$4 sm:$0xff]   ;;  %v702_v2 = vld [vmem:[%s1070_s1 + $0x70] ss:$8 sps:$4 sm:$0xff]   ;;  %v704_v4 = vld [vmem:[%s1070_s1 + $0x64] ss:$8 sps:$4 sm:$0xff]  }
   0x2   :  { %v700_v1 = vld [vmem:[%s1070_s1 + $0x174] ss:$8 sps:$4 sm:$0xff]   ;;  %458 = vmatprep.subr.bf16.mxu0 %v698_v0  ;;  %v703_v3 = vld [vmem:[%s1070_s1 + $0x170] ss:$8 sps:$4 sm:$0xff]   ;;  %v706_v5 = vld [vmem:[%s1070_s1 + $0x164] ss:$8 sps:$4 sm:$0xff]  }
   0x3   :  { %511 = vmatprep.subr.bf16.mxu1 %v700_v1  ;;  %459 = vmatpush1.bf16.msra.mxu0 %v702_v2  ;;  %v708_v6 = vld [vmem:[%s1070_s1 + $0x60] ss:$8 sps:$4 sm:$0xff]   ;;  %v710_v8 = vld [vmem:[%s1070_s1 + $0x54] ss:$8 sps:$4 sm:$0xff]   ;;  %v714_v10 = vld [vmem:[%s1070_s1 + $0x50] ss:$8 sps:$4 sm:$0xff]  }
   0x4   :  { %512 = vmatpush1.bf16.msra.mxu1 %v703_v3  ;;  %460 = vmatprep.subr.bf16.mxu0 %v704_v4  ;;  %v709_v7 = vld [vmem:[%s1070_s1 + $0x160] ss:$8 sps:$4 sm:$0xff]   ;;  %v712_v9 = vld [vmem:[%s1070_s1 + $0x154] ss:$8 sps:$4 sm:$0xff]   ;;  %v715_v11 = vld [vmem:[%s1070_s1 + $0x150] ss:$8 sps:$4 sm:$0xff]  }
   0x5   :  { %513 = vmatprep.subr.bf16.mxu1 %v706_v5  ;;  %v716_v12 = vld [vmem:[%s1070_s1 + $0x44] ss:$8 sps:$4 sm:$0xff]   ;;  %v720_v14 = vld [vmem:[%s1070_s1 + $0x40] ss:$8 sps:$4 sm:$0xff]   ;;  %v722_v16 = vld [vmem:[%s1070_s1 + $0x34] ss:$8 sps:$4 sm:$0xff]  }
   0x6   :  { %v718_v13 = vld [vmem:[%s1070_s1 + $0x144] ss:$8 sps:$4 sm:$0xff]   ;;  %v721_v15 = vld [vmem:[%s1070_s1 + $0x140] ss:$8 sps:$4 sm:$0xff]   ;;  %v724_v17 = vld [vmem:[%s1070_s1 + $0x134] ss:$8 sps:$4 sm:$0xff]  }
   0x7   :  { %461 = vmatpush1.bf16.msra.mxu0 %v708_v6  ;;  %v726_v18 = vld [vmem:[%s1070_s1 + $0x30] ss:$8 sps:$4 sm:$0xff]   ;;  %v728_v20 = vld [vmem:[%s1070_s1 + $0x24] ss:$8 sps:$4 sm:$0xff]   ;;  %v732_v22 = vld [vmem:[%s1070_s1 + $0x20] ss:$8 sps:$4 sm:$0xff]  }
   0x8   :  { %514 = vmatpush1.bf16.msra.mxu1 %v709_v7  ;;  %462 = vmatprep.subr.bf16.mxu0 %v710_v8  ;;  %v727_v19 = vld [vmem:[%s1070_s1 + $0x130] ss:$8 sps:$4 sm:$0xff]   ;;  %v730_v21 = vld [vmem:[%s1070_s1 + $0x124] ss:$8 sps:$4 sm:$0xff]   ;;  %v733_v23 = vld [vmem:[%s1070_s1 + $0x120] ss:$8 sps:$4 sm:$0xff]   ;;  %v88_v8 = vlaneseq }
   0x9   :  { %515 = vmatprep.subr.bf16.mxu1 %v712_v9  ;;  %v734_v24 = vld [vmem:[%s1070_s1 + $0x14] ss:$8 sps:$4 sm:$0xff]   ;;  %v738_v26 = vld [vmem:[%s1070_s1 + $0x10] ss:$8 sps:$4 sm:$0xff]   ;;  %v740_v28 = vld [vmem:[%s1070_s1 + $0x4] ss:$8 sps:$4 sm:$0xff]  }
   0xa   :  { %v736_v25 = vld [vmem:[%s1070_s1 + $0x114] ss:$8 sps:$4 sm:$0xff]   ;;  %v739_v27 = vld [vmem:[%s1070_s1 + $0x110] ss:$8 sps:$4 sm:$0xff]   ;;  %v742_v29 = vld [vmem:[%s1070_s1 + $0x104] ss:$8 sps:$4 sm:$0xff]  }
   0xb   :  { %463 = vmatpush1.bf16.msra.mxu0 %v714_v10  ;;  %v744_v30 = vld [vmem:[%s1070_s1] ss:$8 sps:$4 sm:$0xff]   ;;  %v746_v32 = vld [vmem:[%s1070_s1 + $0xf4] ss:$8 sps:$4 sm:$0xff]   ;;  %v750_v34 = vld [vmem:[%s1070_s1 + $0xf0] ss:$8 sps:$4 sm:$0xff]  }
   0xc   :  { %516 = vmatpush1.bf16.msra.mxu1 %v715_v11  ;;  %464 = vmatprep.subr.bf16.mxu0 %v716_v12  ;;  %v745_v31 = vld [vmem:[%s1070_s1 + $0x100] ss:$8 sps:$4 sm:$0xff]   ;;  %v748_v33 = vld [vmem:[%s1070_s1 + $0x1f4] ss:$8 sps:$4 sm:$0xff]   ;;  %v751_v35 = vld [vmem:[%s1070_s1 + $0x1f0] ss:$8 sps:$4 sm:$0xff]  }
   0xd   :  { %517 = vmatprep.subr.bf16.mxu1 %v718_v13  ;;  %v752_v36 = vld [vmem:[%s1070_s1 + $0xe4] ss:$8 sps:$4 sm:$0xff]   ;;  %v756_v38 = vld [vmem:[%s1070_s1 + $0xe0] ss:$8 sps:$4 sm:$0xff]   ;;  %v758_v40 = vld [vmem:[%s1070_s1 + $0xd4] ss:$8 sps:$4 sm:$0xff]  }
   0xe   :  { %v754_v37 = vld [vmem:[%s1070_s1 + $0x1e4] ss:$8 sps:$4 sm:$0xff]   ;;  %v757_v39 = vld [vmem:[%s1070_s1 + $0x1e0] ss:$8 sps:$4 sm:$0xff]   ;;  %v760_v41 = vld [vmem:[%s1070_s1 + $0x1d4] ss:$8 sps:$4 sm:$0xff]  }
   0xf   :  { %465 = vmatpush1.bf16.msra.mxu0 %v720_v14  ;;  %v762_v42 = vld [vmem:[%s1070_s1 + $0xd0] ss:$8 sps:$4 sm:$0xff]   ;;  %v764_v44 = vld [vmem:[%s1070_s1 + $0xc4] ss:$8 sps:$4 sm:$0xff]   ;;  %v768_v46 = vld [vmem:[%s1070_s1 + $0xc0] ss:$8 sps:$4 sm:$0xff]  }
  0x10   :  { %518 = vmatpush1.bf16.msra.mxu1 %v721_v15  ;;  %466 = vmatprep.subr.bf16.mxu0 %v722_v16  ;;  %v763_v43 = vld [vmem:[%s1070_s1 + $0x1d0] ss:$8 sps:$4 sm:$0xff]   ;;  %v766_v45 = vld [vmem:[%s1070_s1 + $0x1c4] ss:$8 sps:$4 sm:$0xff]   ;;  %v769_v47 = vld [vmem:[%s1070_s1 + $0x1c0] ss:$8 sps:$4 sm:$0xff]  }
  0x11   :  { %519 = vmatprep.subr.bf16.mxu1 %v724_v17  ;;  %v770_v48 = vld [vmem:[%s1070_s1 + $0xb4] ss:$8 sps:$4 sm:$0xff]   ;;  %v774_v52 = vld [vmem:[%s1070_s1 + $0xb0] ss:$8 sps:$4 sm:$0xff]   ;;  %v776_v54 = vld [vmem:[%s1070_s1 + $0xa4] ss:$8 sps:$4 sm:$0xff]  }
  0x12   :  { %v796_v49 = vld [vmem:[%s1071_s0 + $0x4] ss:$16 sps:$4 sm:$0xff]   ;;  %v799_v51 = vld [vmem:[%s1071_s0 + $0xc] ss:$16 sps:$4 sm:$0xff]   ;;  %v775_v53 = vld [vmem:[%s1070_s1 + $0x1b0] ss:$8 sps:$4 sm:$0xff]  }
  0x13   :  { %467 = vmatpush1.bf16.msra.mxu0 %v726_v18  ;;  %v772_v50 = vld [vmem:[%s1070_s1 + $0x1b4] ss:$8 sps:$4 sm:$0xff]   ;;  %490 = vmatprep.mubr.bf16.mxu0 %v796_v49  ;;  %v778_v55 = vld [vmem:[%s1070_s1 + $0x1a4] ss:$8 sps:$4 sm:$0xff]   ;;  %v780_v56 = vld [vmem:[%s1070_s1 + $0xa0] ss:$8 sps:$4 sm:$0xff]  }
  0x14   :  { %520 = vmatpush1.bf16.msra.mxu1 %v727_v19  ;;  %468 = vmatprep.subr.bf16.mxu0 %v728_v20  ;;  %v781_v57 = vld [vmem:[%s1070_s1 + $0x1a0] ss:$8 sps:$4 sm:$0xff]   ;;  %v782_v58 = vld [vmem:[%s1070_s1 + $0x94] ss:$8 sps:$4 sm:$0xff]   ;;  %v786_v60 = vld [vmem:[%s1070_s1 + $0x90] ss:$8 sps:$4 sm:$0xff]  }
  0x15   :  { %521 = vmatprep.subr.bf16.mxu1 %v730_v21  ;;  %543 = vmatprep.mubr.bf16.mxu1 %v799_v51  ;;  %v784_v59 = vld [vmem:[%s1070_s1 + $0x194] ss:$8 sps:$4 sm:$0xff]   ;;  %v787_v61 = vld [vmem:[%s1070_s1 + $0x190] ss:$8 sps:$4 sm:$0xff]   ;;  %v788_v62 = vld [vmem:[%s1070_s1 + $0x84] ss:$8 sps:$4 sm:$0xff]  }
  0x16   :  { %v790_v63 = vld [vmem:[%s1070_s1 + $0x184] ss:$8 sps:$4 sm:$0xff]   ;;  %v792_v0 = vld [vmem:[%s1070_s1 + $0x80] ss:$8 sps:$4 sm:$0xff]   ;;  %v89_v9 = vshrl.u32 %v88_v8, 7 }
  0x17   :  { %469 = vmatpush1.bf16.msra.mxu0 %v732_v22  ;;  %v793_v1 = vld [vmem:[%s1070_s1 + $0x180] ss:$8 sps:$4 sm:$0xff]   ;;  %v800_v4 = vld [vmem:[%s1071_s0 + $0x24] ss:$16 sps:$4 sm:$0xff]   ;;  %v802_v5 = vld [vmem:[%s1071_s0 + $0x2c] ss:$16 sps:$4 sm:$0xff]  }
  0x18   :  { %522 = vmatpush1.bf16.msra.mxu1 %v733_v23  ;;  %470 = vmatprep.subr.bf16.mxu0 %v734_v24  ;;  %v794_v2 = vld [vmem:[%s1071_s0] ss:$16 sps:$4 sm:$0xff]   ;;  %v797_v3 = vld [vmem:[%s1071_s0 + $0x8] ss:$16 sps:$4 sm:$0xff]   ;;  %v90_v10 = vsub.s32 0, %v89_v9  ;;  %v94_v12 = vsub.s32 1, %v89_v9 }
  0x19   :  { %523 = vmatprep.subr.bf16.mxu1 %v736_v25  ;;  %v804_v6 = vld [vmem:[%s1071_s0 + $0x20] ss:$16 sps:$4 sm:$0xff]   ;;  %v805_v7 = vld [vmem:[%s1071_s0 + $0x28] ss:$16 sps:$4 sm:$0xff]   ;;  %s806_s0 = smov 64  }
  0x1a   :  { %v86_v11 = vld [vmem:[%s1072_s2] sm:$0x3] }
  0x1b   :  { %471 = vmatpush1.bf16.msra.mxu0 %v738_v26  ;;  %v91_v13 = vrot.slane %v86_v11, %v90_v10  ;;  %v95_v14 = vrot.slane %v86_v11, %v94_v12 }
  0x1c   :  { %524 = vmatpush1.bf16.msra.mxu1 %v739_v27  ;;  %472 = vmatprep.subr.bf16.mxu0 %v740_v28 }
  0x1d   :  { %525 = vmatprep.subr.bf16.mxu1 %v742_v29 }
  0x1f   :  { %473 = vmatpush1.bf16.msra.mxu0 %v744_v30 }
  0x20   :  { %526 = vmatpush1.bf16.msra.mxu1 %v745_v31  ;;  %474 = vmatprep.subr.bf16.mxu0 %v746_v32 }
  0x21   :  { %527 = vmatprep.subr.bf16.mxu1 %v748_v33 }
  0x23   :  { %475 = vmatpush2.bf16.msra.mxu0 %v750_v34 }
  0x24   :  { %528 = vmatpush2.bf16.msra.mxu1 %v751_v35  ;;  %476 = vmatprep.subr.bf16.mxu0 %v752_v36 }
  0x25   :  { %529 = vmatprep.subr.bf16.mxu1 %v754_v37 }
  0x27   :  { %477 = vmatpush2.bf16.msra.mxu0 %v756_v38 }
  0x28   :  { %530 = vmatpush2.bf16.msra.mxu1 %v757_v39  ;;  %478 = vmatprep.subr.bf16.mxu0 %v758_v40 }
  0x29   :  { %531 = vmatprep.subr.bf16.mxu1 %v760_v41 }
  0x2b   :  { %479 = vmatpush2.bf16.msra.mxu0 %v762_v42 }
  0x2c   :  { %532 = vmatpush2.bf16.msra.mxu1 %v763_v43  ;;  %480 = vmatprep.subr.bf16.mxu0 %v764_v44 }
  0x2d   :  { %533 = vmatprep.subr.bf16.mxu1 %v766_v45 }
  0x2f   :  { %481 = vmatpush2.bf16.msra.mxu0 %v768_v46 }
  0x30   :  { %534 = vmatpush2.bf16.msra.mxu1 %v769_v47  ;;  %482 = vmatprep.subr.bf16.mxu0 %v770_v48 }
  0x31   :  { %535 = vmatprep.subr.bf16.mxu1 %v772_v50 }
  0x33   :  { %483 = vmatpush2.bf16.msra.mxu0 %v774_v52 }
  0x34   :  { %536 = vmatpush2.bf16.msra.mxu1 %v775_v53  ;;  %484 = vmatprep.subr.bf16.mxu0 %v776_v54 }
  0x35   :  { %537 = vmatprep.subr.bf16.mxu1 %v778_v55 }
  0x37   :  { %485 = vmatpush2.bf16.msra.mxu0 %v780_v56 }
  0x38   :  { %538 = vmatpush2.bf16.msra.mxu1 %v781_v57  ;;  %486 = vmatprep.subr.bf16.mxu0 %v782_v58 }
  0x39   :  { %539 = vmatprep.subr.bf16.mxu1 %v784_v59 }
  0x3b   :  { %487 = vmatpush2.bf16.msra.mxu0 %v786_v60 }
  0x3c   :  { %540 = vmatpush2.bf16.msra.mxu1 %v787_v61  ;;  %488 = vmatprep.subr.bf16.mxu0 %v788_v62 }
  0x3d   :  { %541 = vmatprep.subr.bf16.mxu1 %v790_v63 }
  0x3f   :  { %489 = vmatpush2.bf16.msra.mxu0 %v792_v0 }
  0x40   :  { %542 = vmatpush2.bf16.msra.mxu1 %v793_v1 }
  0x42   :  { %491 = vmatmul.mubr.bf16.vlgmr.msra.gmra.mxu0 %v794_v2 }
  0x43   :  { %544 = vmatmul.mubr.bf16.vlgmr.msra.gmra.mxu1 %v797_v3  ;;  %500 = vmatprep.mubr.bf16.mxu0 %v800_v4 }
  0x44   :  { %553 = vmatprep.mubr.bf16.mxu1 %v802_v5 }
  0x4a   :  { %501 = vmatmul.mubr.bf16.gmra.mxu0 %v804_v6 }
  0x4b   :  { %554 = vmatmul.mubr.bf16.gmra.mxu1 %v805_v7 }
 0x102   :  { %v492_v15 = vpop.f32.mrf.mxu0 }
 0x103   :  { %v545_v16 = vpop.f32.mrf.mxu1  ;;  %v493_v17 = vadd.f32 %v492_v15, %v91_v13 }
 0x104   :  { %v494_v18 = vpop.f32.mrf.mxu0 }
 0x105   :  { %v547_v19 = vpop.f32.mrf.mxu1  ;;  %v546_v20 = vadd.f32 %v545_v16, %v493_v17  ;;  %v495_v21 = vadd.f32 %v494_v18, %v95_v14 }
 0x106   :  { %v496_v22 = vpop.f32.mrf.mxu0 }
 0x107   :  { %v549_v23 = vpop.f32.mrf.mxu1  ;;  %v564_v24 = vmax.f32 %v546_v20, 0.0  ;;  %v548_v25 = vadd.f32 %v547_v19, %v495_v21  ;;  %v497_v26 = vadd.f32 %v496_v22, %v91_v13 }
 0x108   :  { %v498_v27 = vpop.f32.mrf.mxu0 }
 0x109   :  { %v551_v28 = vpop.f32.mrf.mxu1  ;;  %v499_v29 = vadd.f32 %v498_v27, %v95_v14  ;;  %576 = vrot.lane.b32.xlu0 %v564_v24, %s806_s0  ;;  %v565_v32 = vmax.f32 %v548_v25, 0.0  ;;  %v550_v33 = vadd.f32 %v549_v23, %v497_v26 }
 0x10a   :  { %v502_v30 = vpop.f32.mrf.mxu0 }
 0x10b   :  { %v555_v31 = vpop.f32.mrf.mxu1  ;;  %v552_v34 = vadd.f32 %v551_v28, %v499_v29  ;;  %v503_v35 = vadd.f32 %v502_v30, %v91_v13  ;;  %v566_v42 = vmax.f32 %v550_v33, 0.0 }
 0x10c   :  { %v504_v36 = vpop.f32.mrf.mxu0 }
 0x10d   :  { %v557_v37 = vpop.f32.mrf.mxu1  ;;  %v567_v38 = vmax.f32 %v552_v34, 0.0  ;;  %v556_v39 = vadd.f32 %v555_v31, %v503_v35  ;;  %v505_v40 = vadd.f32 %v504_v36, %v95_v14  ;;  %600 = vrot.lane.b32.xlu0 %v565_v32, %s806_s0 }
 0x10e   :  { %v506_v41 = vpop.f32.mrf.mxu0 }
 0x10f   :  { %v568_v43 = vmax.f32 %v556_v39, 0.0  ;;  %v558_v44 = vadd.f32 %v557_v37, %v505_v40  ;;  %v507_v45 = vadd.f32 %v506_v41, %v91_v13  ;;  %602 = vrot.lane.b32.xlu1 %v567_v38, %s806_s0  ;;  %v559_v46 = vpop.f32.mrf.mxu1 }
 0x110   :  { %v508_v47 = vpop.f32.mrf.mxu0 }
 0x111   :  { %v560_v48 = vadd.f32 %v559_v46, %v507_v45  ;;  %v509_v49 = vadd.f32 %v508_v47, %v95_v14  ;;  %578 = vrot.lane.b32.xlu0 %v566_v42, %s806_s0  ;;  %v569_v50 = vmax.f32 %v558_v44, 0.0  ;;  %v561_v51 = vpop.f32.mrf.mxu1 }
 0x113   :  { %580 = vrot.lane.b32.xlu1 %v568_v43, %s806_s0  ;;  %v570_v52 = vmax.f32 %v560_v48, 0.0  ;;  %v562_v53 = vadd.f32 %v561_v51, %v509_v49 }
 0x115   :  { %604 = vrot.lane.b32.xlu0 %v569_v50, %s806_s0  ;;  %v571_v54 = vmax.f32 %v562_v53, 0.0 }
 0x117   :  { %582 = vrot.lane.b32.xlu1 %v570_v52, %s806_s0 }
 0x11b   :  { %606 = vrot.lane.b32.xlu1 %v571_v54, %s806_s0 }
 0x17b   :  { %v577_v55 = vpop.permute.xlu0 %576 }
 0x17c   :  { %v588_v56 = vmax.f32 %v564_v24, %v577_v55 }
 0x17e   :  { %v592_v57 = vmax.f32 %v588_v56, %v565_v32 }
 0x17f   :  { %v601_v58 = vpop.permute.xlu0 %600 }
 0x180   :  { %v612_v59 = vmax.f32 %v592_v57, %v601_v58 }
 0x181   :  { %v603_v60 = vpop.permute.xlu1 %602 }
 0x182   :  { %617 = vst.msk [vmem:[%s1073_s3] sm:$0xff] %vm616_vm0, %v612_v59 }
 0x183   :  { %v579_v61 = vpop.permute.xlu0 %578 }
 0x184   :  { %v589_v62 = vmax.f32 %v566_v42, %v579_v61 }
 0x185   :  { %v581_v63 = vpop.permute.xlu1 %580 }
 0x186   :  { %v593_v0 = vmax.f32 %v589_v62, %v567_v38  ;;  %v590_v1 = vmax.f32 %v568_v43, %v581_v63 }
 0x187   :  { %v605_v4 = vpop.permute.xlu0 %604 }
 0x188   :  { %v613_v2 = vmax.f32 %v593_v0, %v603_v60  ;;  %v594_v3 = vmax.f32 %v590_v1, %v569_v50 }
 0x189   :  { %v583_v5 = vpop.permute.xlu1 %582 }
 0x18a   :  { %618 = vst.msk [vmem:[%s1073_s3 + $0x8] sm:$0xff] %vm616_vm0, %v613_v2  ;;  %v614_v6 = vmax.f32 %v594_v3, %v605_v4  ;;  %v591_v7 = vmax.f32 %v570_v52, %v583_v5 }
 0x18c   :  { %619 = vst.msk [vmem:[%s1073_s3 + $0x10] sm:$0xff] %vm616_vm0, %v614_v6  ;;  %v595_v8 = vmax.f32 %v591_v7, %v571_v54 }
 0x18d   :  { %v607_v9 = vpop.permute.xlu1 %606 }
 0x18e   :  { %v615_v10 = vmax.f32 %v595_v8, %v607_v9 }
 0x190   :  { %620 = vst.msk [vmem:[%s1073_s3 + $0x18] sm:$0xff] %vm616_vm0, %v615_v10 }

// kernel: model_forward.9
= control target key start
LH: loop header
LB: loop body
LE: loop exit
PB: predicated region body
PF: predicated region fallthrough
CT: control target
= control target key end

     0   :  { %s997_s1 = inlined_call_operand.vmem [shape: bf16[512,256], index: 1, kind: input, shape index: {}]   ;;  %s998_s0 = inlined_call_operand.vmem [shape: bf16[24,512], index: 0, kind: input, shape index: {}]   ;;  %s999_s2 = inlined_call_operand.vmem [shape: f32[1,256], index: 2, kind: input, shape index: {}]   ;;  %s1000_s3 = inlined_call_operand.vmem [shape: f32[24,256], index: 3, kind: output, shape index: {}]  }
   0x1   :  { %v640_v0 = vld [vmem:[%s997_s1 + $0x74] ss:$8 sps:$4 sm:$0xff]   ;;  %v644_v2 = vld [vmem:[%s997_s1 + $0x70] ss:$8 sps:$4 sm:$0xff]   ;;  %v646_v4 = vld [vmem:[%s997_s1 + $0x64] ss:$8 sps:$4 sm:$0xff]  }
   0x2   :  { %v642_v1 = vld [vmem:[%s997_s1 + $0x174] ss:$8 sps:$4 sm:$0xff]   ;;  %450 = vmatprep.subr.bf16.mxu0 %v640_v0  ;;  %v645_v3 = vld [vmem:[%s997_s1 + $0x170] ss:$8 sps:$4 sm:$0xff]   ;;  %v648_v5 = vld [vmem:[%s997_s1 + $0x164] ss:$8 sps:$4 sm:$0xff]  }
   0x3   :  { %501 = vmatprep.subr.bf16.mxu1 %v642_v1  ;;  %451 = vmatpush1.bf16.msra.mxu0 %v644_v2  ;;  %v650_v6 = vld [vmem:[%s997_s1 + $0x60] ss:$8 sps:$4 sm:$0xff]   ;;  %v652_v8 = vld [vmem:[%s997_s1 + $0x54] ss:$8 sps:$4 sm:$0xff]   ;;  %v656_v10 = vld [vmem:[%s997_s1 + $0x50] ss:$8 sps:$4 sm:$0xff]  }
   0x4   :  { %502 = vmatpush1.bf16.msra.mxu1 %v645_v3  ;;  %452 = vmatprep.subr.bf16.mxu0 %v646_v4  ;;  %v651_v7 = vld [vmem:[%s997_s1 + $0x160] ss:$8 sps:$4 sm:$0xff]   ;;  %v654_v9 = vld [vmem:[%s997_s1 + $0x154] ss:$8 sps:$4 sm:$0xff]   ;;  %v657_v11 = vld [vmem:[%s997_s1 + $0x150] ss:$8 sps:$4 sm:$0xff]  }
   0x5   :  { %503 = vmatprep.subr.bf16.mxu1 %v648_v5  ;;  %v658_v12 = vld [vmem:[%s997_s1 + $0x44] ss:$8 sps:$4 sm:$0xff]   ;;  %v662_v14 = vld [vmem:[%s997_s1 + $0x40] ss:$8 sps:$4 sm:$0xff]   ;;  %v664_v16 = vld [vmem:[%s997_s1 + $0x34] ss:$8 sps:$4 sm:$0xff]  }
   0x6   :  { %v660_v13 = vld [vmem:[%s997_s1 + $0x144] ss:$8 sps:$4 sm:$0xff]   ;;  %v663_v15 = vld [vmem:[%s997_s1 + $0x140] ss:$8 sps:$4 sm:$0xff]   ;;  %v666_v17 = vld [vmem:[%s997_s1 + $0x134] ss:$8 sps:$4 sm:$0xff]  }
   0x7   :  { %453 = vmatpush1.bf16.msra.mxu0 %v650_v6  ;;  %v668_v18 = vld [vmem:[%s997_s1 + $0x30] ss:$8 sps:$4 sm:$0xff]   ;;  %v670_v20 = vld [vmem:[%s997_s1 + $0x24] ss:$8 sps:$4 sm:$0xff]   ;;  %v674_v22 = vld [vmem:[%s997_s1 + $0x20] ss:$8 sps:$4 sm:$0xff]  }
   0x8   :  { %504 = vmatpush1.bf16.msra.mxu1 %v651_v7  ;;  %454 = vmatprep.subr.bf16.mxu0 %v652_v8  ;;  %v669_v19 = vld [vmem:[%s997_s1 + $0x130] ss:$8 sps:$4 sm:$0xff]   ;;  %v672_v21 = vld [vmem:[%s997_s1 + $0x124] ss:$8 sps:$4 sm:$0xff]   ;;  %v675_v23 = vld [vmem:[%s997_s1 + $0x120] ss:$8 sps:$4 sm:$0xff]  }
   0x9   :  { %505 = vmatprep.subr.bf16.mxu1 %v654_v9  ;;  %v676_v24 = vld [vmem:[%s997_s1 + $0x14] ss:$8 sps:$4 sm:$0xff]   ;;  %v680_v26 = vld [vmem:[%s997_s1 + $0x10] ss:$8 sps:$4 sm:$0xff]   ;;  %v682_v28 = vld [vmem:[%s997_s1 + $0x4] ss:$8 sps:$4 sm:$0xff]  }
   0xa   :  { %v678_v25 = vld [vmem:[%s997_s1 + $0x114] ss:$8 sps:$4 sm:$0xff]   ;;  %v681_v27 = vld [vmem:[%s997_s1 + $0x110] ss:$8 sps:$4 sm:$0xff]   ;;  %v684_v29 = vld [vmem:[%s997_s1 + $0x104] ss:$8 sps:$4 sm:$0xff]  }
   0xb   :  { %455 = vmatpush1.bf16.msra.mxu0 %v656_v10  ;;  %v686_v30 = vld [vmem:[%s997_s1] ss:$8 sps:$4 sm:$0xff]   ;;  %v688_v32 = vld [vmem:[%s997_s1 + $0xf4] ss:$8 sps:$4 sm:$0xff]   ;;  %v692_v34 = vld [vmem:[%s997_s1 + $0xf0] ss:$8 sps:$4 sm:$0xff]   ;;  %v86_v10 = vlaneseq }
   0xc   :  { %506 = vmatpush1.bf16.msra.mxu1 %v657_v11  ;;  %456 = vmatprep.subr.bf16.mxu0 %v658_v12  ;;  %v687_v31 = vld [vmem:[%s997_s1 + $0x100] ss:$8 sps:$4 sm:$0xff]   ;;  %v690_v33 = vld [vmem:[%s997_s1 + $0x1f4] ss:$8 sps:$4 sm:$0xff]   ;;  %v693_v35 = vld [vmem:[%s997_s1 + $0x1f0] ss:$8 sps:$4 sm:$0xff]  }
   0xd   :  { %507 = vmatprep.subr.bf16.mxu1 %v660_v13  ;;  %v694_v36 = vld [vmem:[%s997_s1 + $0xe4] ss:$8 sps:$4 sm:$0xff]   ;;  %v698_v38 = vld [vmem:[%s997_s1 + $0xe0] ss:$8 sps:$4 sm:$0xff]   ;;  %v700_v40 = vld [vmem:[%s997_s1 + $0xd4] ss:$8 sps:$4 sm:$0xff]  }
   0xe   :  { %v696_v37 = vld [vmem:[%s997_s1 + $0x1e4] ss:$8 sps:$4 sm:$0xff]   ;;  %v699_v39 = vld [vmem:[%s997_s1 + $0x1e0] ss:$8 sps:$4 sm:$0xff]   ;;  %v702_v41 = vld [vmem:[%s997_s1 + $0x1d4] ss:$8 sps:$4 sm:$0xff]  }
   0xf   :  { %457 = vmatpush1.bf16.msra.mxu0 %v662_v14  ;;  %v704_v42 = vld [vmem:[%s997_s1 + $0xd0] ss:$8 sps:$4 sm:$0xff]   ;;  %v706_v44 = vld [vmem:[%s997_s1 + $0xc4] ss:$8 sps:$4 sm:$0xff]   ;;  %v710_v46 = vld [vmem:[%s997_s1 + $0xc0] ss:$8 sps:$4 sm:$0xff]  }
  0x10   :  { %508 = vmatpush1.bf16.msra.mxu1 %v663_v15  ;;  %458 = vmatprep.subr.bf16.mxu0 %v664_v16  ;;  %v705_v43 = vld [vmem:[%s997_s1 + $0x1d0] ss:$8 sps:$4 sm:$0xff]   ;;  %v708_v45 = vld [vmem:[%s997_s1 + $0x1c4] ss:$8 sps:$4 sm:$0xff]   ;;  %v711_v48 = vld [vmem:[%s997_s1 + $0x1c0] ss:$8 sps:$4 sm:$0xff]  }
  0x11   :  { %509 = vmatprep.subr.bf16.mxu1 %v666_v17  ;;  %v738_v47 = vld [vmem:[%s998_s0 + $0x4] ss:$16 sps:$4 sm:$0xff]   ;;  %v741_v51 = vld [vmem:[%s998_s0 + $0xc] ss:$16 sps:$4 sm:$0xff]   ;;  %v716_v52 = vld [vmem:[%s997_s1 + $0xb0] ss:$8 sps:$4 sm:$0xff]  }
  0x12   :  { %v712_v49 = vld [vmem:[%s997_s1 + $0xb4] ss:$8 sps:$4 sm:$0xff]   ;;  %482 = vmatprep.mubr.bf16.mxu0 %v738_v47  ;;  %533 = vmatprep.mubr.bf16.mxu1 %v741_v51  ;;  %v717_v53 = vld [vmem:[%s997_s1 + $0x1b0] ss:$8 sps:$4 sm:$0xff]   ;;  %v718_v54 = vld [vmem:[%s997_s1 + $0xa4] ss:$8 sps:$4 sm:$0xff]  }
  0x13   :  { %459 = vmatpush1.bf16.msra.mxu0 %v668_v18  ;;  %v714_v50 = vld [vmem:[%s997_s1 + $0x1b4] ss:$8 sps:$4 sm:$0xff]   ;;  %v720_v55 = vld [vmem:[%s997_s1 + $0x1a4] ss:$8 sps:$4 sm:$0xff]   ;;  %v722_v56 = vld [vmem:[%s997_s1 + $0xa0] ss:$8 sps:$4 sm:$0xff]  }
  0x14   :  { %510 = vmatpush1.bf16.msra.mxu1 %v669_v19  ;;  %460 = vmatprep.subr.bf16.mxu0 %v670_v20  ;;  %v723_v57 = vld [vmem:[%s997_s1 + $0x1a0] ss:$8 sps:$4 sm:$0xff]   ;;  %v724_v58 = vld [vmem:[%s997_s1 + $0x94] ss:$8 sps:$4 sm:$0xff]   ;;  %v728_v60 = vld [vmem:[%s997_s1 + $0x90] ss:$8 sps:$4 sm:$0xff]  }
  0x15   :  { %511 = vmatprep.subr.bf16.mxu1 %v672_v21  ;;  %v726_v59 = vld [vmem:[%s997_s1 + $0x194] ss:$8 sps:$4 sm:$0xff]   ;;  %v729_v61 = vld [vmem:[%s997_s1 + $0x190] ss:$8 sps:$4 sm:$0xff]   ;;  %v730_v62 = vld [vmem:[%s997_s1 + $0x84] ss:$8 sps:$4 sm:$0xff]  }
  0x16   :  { %v732_v63 = vld [vmem:[%s997_s1 + $0x184] ss:$8 sps:$4 sm:$0xff]   ;;  %v734_v0 = vld [vmem:[%s997_s1 + $0x80] ss:$8 sps:$4 sm:$0xff]   ;;  %v87_v11 = vshrl.u32 %v86_v10, 7 }
  0x17   :  { %461 = vmatpush1.bf16.msra.mxu0 %v674_v22  ;;  %v735_v1 = vld [vmem:[%s997_s1 + $0x180] ss:$8 sps:$4 sm:$0xff]  }
  0x18   :  { %512 = vmatpush1.bf16.msra.mxu1 %v675_v23  ;;  %462 = vmatprep.subr.bf16.mxu0 %v676_v24  ;;  %v18_v2 = vld [vmem:[%s998_s0 + $0x20] sm:$0xff]  ;;  %v19_v3 = vld [vmem:[%s998_s0 + $0x28] sm:$0xff]  ;;  %v88_v12 = vsub.s32 0, %v87_v11  ;;  %v92_v14 = vsub.s32 1, %v87_v11 }
  0x19   :  { %513 = vmatprep.subr.bf16.mxu1 %v678_v25  ;;  %v736_v4 = vld [vmem:[%s998_s0] ss:$16 sps:$4 sm:$0xff]   ;;  %v739_v5 = vld [vmem:[%s998_s0 + $0x8] ss:$16 sps:$4 sm:$0xff]   ;;  %v573_v6 = vcombine.high %v18_v2, %v18_v2  ;;  %v575_v7 = vcombine.high %v19_v3, %v19_v3  ;;  %v572_v8 = vcombine.low %v18_v2, %v18_v2  ;;  %v574_v9 = vcombine.low %v19_v3, %v19_v3 }
  0x1a   :  { %v84_v13 = vld [vmem:[%s999_s2] sm:$0x3] }
  0x1b   :  { %463 = vmatpush1.bf16.msra.mxu0 %v680_v26  ;;  %v89_v15 = vrot.slane %v84_v13, %v88_v12  ;;  %v93_v16 = vrot.slane %v84_v13, %v92_v14 }
  0x1c   :  { %514 = vmatpush1.bf16.msra.mxu1 %v681_v27  ;;  %464 = vmatprep.subr.bf16.mxu0 %v682_v28 }
  0x1d   :  { %515 = vmatprep.subr.bf16.mxu1 %v684_v29 }
  0x1f   :  { %465 = vmatpush1.bf16.msra.mxu0 %v686_v30 }
  0x20   :  { %516 = vmatpush1.bf16.msra.mxu1 %v687_v31  ;;  %466 = vmatprep.subr.bf16.mxu0 %v688_v32 }
  0x21   :  { %517 = vmatprep.subr.bf16.mxu1 %v690_v33 }
  0x23   :  { %467 = vmatpush2.bf16.msra.mxu0 %v692_v34 }
  0x24   :  { %518 = vmatpush2.bf16.msra.mxu1 %v693_v35  ;;  %468 = vmatprep.subr.bf16.mxu0 %v694_v36 }
  0x25   :  { %519 = vmatprep.subr.bf16.mxu1 %v696_v37 }
  0x27   :  { %469 = vmatpush2.bf16.msra.mxu0 %v698_v38 }
  0x28   :  { %520 = vmatpush2.bf16.msra.mxu1 %v699_v39  ;;  %470 = vmatprep.subr.bf16.mxu0 %v700_v40 }
  0x29   :  { %521 = vmatprep.subr.bf16.mxu1 %v702_v41 }
  0x2b   :  { %471 = vmatpush2.bf16.msra.mxu0 %v704_v42 }
  0x2c   :  { %522 = vmatpush2.bf16.msra.mxu1 %v705_v43  ;;  %472 = vmatprep.subr.bf16.mxu0 %v706_v44 }
  0x2d   :  { %523 = vmatprep.subr.bf16.mxu1 %v708_v45 }
  0x2f   :  { %473 = vmatpush2.bf16.msra.mxu0 %v710_v46 }
  0x30   :  { %524 = vmatpush2.bf16.msra.mxu1 %v711_v48  ;;  %474 = vmatprep.subr.bf16.mxu0 %v712_v49 }
  0x31   :  { %525 = vmatprep.subr.bf16.mxu1 %v714_v50 }
  0x33   :  { %475 = vmatpush2.bf16.msra.mxu0 %v716_v52 }
  0x34   :  { %526 = vmatpush2.bf16.msra.mxu1 %v717_v53  ;;  %476 = vmatprep.subr.bf16.mxu0 %v718_v54 }
  0x35   :  { %527 = vmatprep.subr.bf16.mxu1 %v720_v55 }
  0x37   :  { %477 = vmatpush2.bf16.msra.mxu0 %v722_v56 }
  0x38   :  { %528 = vmatpush2.bf16.msra.mxu1 %v723_v57  ;;  %478 = vmatprep.subr.bf16.mxu0 %v724_v58 }
  0x39   :  { %529 = vmatprep.subr.bf16.mxu1 %v726_v59 }
  0x3b   :  { %479 = vmatpush2.bf16.msra.mxu0 %v728_v60 }
  0x3c   :  { %530 = vmatpush2.bf16.msra.mxu1 %v729_v61  ;;  %480 = vmatprep.subr.bf16.mxu0 %v730_v62 }
  0x3d   :  { %531 = vmatprep.subr.bf16.mxu1 %v732_v63 }
  0x3f   :  { %481 = vmatpush2.bf16.msra.mxu0 %v734_v0 }
  0x40   :  { %532 = vmatpush2.bf16.msra.mxu1 %v735_v1 }
  0x42   :  { %483 = vmatmul.mubr.bf16.vlgmr.msra.gmra.mxu0 %v736_v4 }
  0x43   :  { %534 = vmatmul.mubr.bf16.vlgmr.msra.gmra.mxu1 %v739_v5  ;;  %492 = vmatprep.mubr.bf16.mxu0 %v573_v6 }
  0x44   :  { %543 = vmatprep.mubr.bf16.mxu1 %v575_v7 }
  0x4a   :  { %493 = vmatmul.mubr.bf16.gmra.mxu0 %v572_v8 }
  0x4b   :  { %544 = vmatmul.mubr.bf16.gmra.mxu1 %v574_v9 }
 0x102   :  { %v484_v17 = vpop.f32.mrf.mxu0 }
 0x103   :  { %v535_v18 = vpop.f32.mrf.mxu1  ;;  %v485_v19 = vadd.f32 %v484_v17, %v89_v15 }
 0x104   :  { %v486_v20 = vpop.f32.mrf.mxu0 }
 0x105   :  { %v537_v21 = vpop.f32.mrf.mxu1  ;;  %v536_v22 = vadd.f32 %v535_v18, %v485_v19  ;;  %v487_v23 = vadd.f32 %v486_v20, %v93_v16 }
 0x106   :  { %v488_v24 = vpop.f32.mrf.mxu0 }
 0x107   :  { %v539_v25 = vpop.f32.mrf.mxu1  ;;  %v552_v26 = vmax.f32 %v536_v22, 0.0  ;;  %v538_v27 = vadd.f32 %v537_v21, %v487_v23  ;;  %v489_v28 = vadd.f32 %v488_v24, %v89_v15 }
 0x108   :  { %v490_v29 = vpop.f32.mrf.mxu0 }
 0x109   :  { %v541_v30 = vpop.f32.mrf.mxu1  ;;  %558 = vst [vmem:[%s1000_s3] sm:$0xff] %v552_v26  ;;  %v553_v31 = vmax.f32 %v538_v27, 0.0  ;;  %v540_v32 = vadd.f32 %v539_v25, %v489_v28  ;;  %v491_v33 = vadd.f32 %v490_v29, %v93_v16 }
 0x10a   :  { %v494_v34 = vpop.f32.mrf.mxu0 }
 0x10b   :  { %v545_v35 = vpop.f32.mrf.mxu1  ;;  %559 = vst [vmem:[%s1000_s3 + $0x8] sm:$0xff] %v553_v31  ;;  %v554_v36 = vmax.f32 %v540_v32, 0.0  ;;  %v542_v37 = vadd.f32 %v541_v30, %v491_v33  ;;  %v495_v38 = vadd.f32 %v494_v34, %v89_v15 }
 0x10c   :  { %v496_v39 = vpop.f32.mrf.mxu0 }
 0x10d   :  { %v547_v40 = vpop.f32.mrf.mxu1  ;;  %560 = vst [vmem:[%s1000_s3 + $0x10] sm:$0xff] %v554_v36  ;;  %v555_v41 = vmax.f32 %v542_v37, 0.0  ;;  %v546_v42 = vadd.f32 %v545_v35, %v495_v38  ;;  %v497_v43 = vadd.f32 %v496_v39, %v93_v16 }
 0x10e   :  { %v498_v44 = vpop.f32.mrf.mxu0 }
 0x10f   :  { %v549_v45 = vpop.f32.mrf.mxu1  ;;  %561 = vst [vmem:[%s1000_s3 + $0x18] sm:$0xff] %v555_v41  ;;  %v556_v46 = vmax.f32 %v546_v42, 0.0  ;;  %v548_v47 = vadd.f32 %v547_v40, %v497_v43 }
 0x110   :  { %v499_v48 = vpop.f32.mrf.mxu0 }
 0x111   :  { %v550_v49 = vpop.f32.mrf.mxu1  ;;  %562 = vst [vmem:[%s1000_s3 + $0x20] sm:$0xff] %v556_v46  ;;  %v557_v50 = vmax.f32 %v548_v47, 0.0 }
 0x113   :  { %563 = vst [vmem:[%s1000_s3 + $0x28] sm:$0xff] %v557_v50 }

// kernel: model_forward.8
= control target key start
LH: loop header
LB: loop body
LE: loop exit
PB: predicated region body
PF: predicated region fallthrough
CT: control target
= control target key end

     0   :  { %s3450_s1 = inlined_call_operand.vmem [shape: bf16[1024,512], index: 1, kind: input, shape index: {}]   ;;  %s3451_s0 = inlined_call_operand.vmem [shape: bf16[8,1024], index: 0, kind: input, shape index: {}]   ;;  %s3452_s2 = inlined_call_operand.vmem [shape: f32[1,512], index: 2, kind: input, shape index: {}]   ;;  %s3453_s3 = inlined_call_operand.vmem [shape: f32[8,128], index: 3, kind: output, shape index: {}]  }
   0x1   :  { %v2208_v0 = vld [vmem:[%s3450_s1 + $0xe4] ss:$16 sps:$4 sm:$0xff]   ;;  %v2212_v2 = vld [vmem:[%s3450_s1 + $0xe0] ss:$16 sps:$4 sm:$0xff]   ;;  %v15_v48 = vld [vmem:[%s3451_s0 + $0x8] sm:$0xff] }
   0x2   :  { %v2210_v1 = vld [vmem:[%s3450_s1 + $0x2e4] ss:$16 sps:$4 sm:$0xff]   ;;  %1604 = vmatprep.subr.bf16.mxu0 %v2208_v0  ;;  %v2213_v3 = vld [vmem:[%s3450_s1 + $0x2e0] ss:$16 sps:$4 sm:$0xff]   ;;  %v2772_v51 = vcombine.high %v15_v48, %v15_v48 }
   0x3   :  { %1645 = vmatprep.subr.bf16.mxu1 %v2210_v1  ;;  %v2214_v4 = vld [vmem:[%s3450_s1 + $0xc4] ss:$16 sps:$4 sm:$0xff]   ;;  %1605 = vmatpush1.bf16.msra.mxu0 %v2212_v2  ;;  %v2218_v6 = vld [vmem:[%s3450_s1 + $0xc0] ss:$16 sps:$4 sm:$0xff]  }
   0x4   :  { %1646 = vmatpush1.bf16.msra.mxu1 %v2213_v3  ;;  %v2216_v5 = vld [vmem:[%s3450_s1 + $0x2c4] ss:$16 sps:$4 sm:$0xff]   ;;  %1606 = vmatprep.subr.bf16.mxu0 %v2214_v4  ;;  %v2219_v7 = vld [vmem:[%s3450_s1 + $0x2c0] ss:$16 sps:$4 sm:$0xff]  }
   0x5   :  { %1647 = vmatprep.subr.bf16.mxu1 %v2216_v5  ;;  %v2220_v8 = vld [vmem:[%s3450_s1 + $0xa4] ss:$16 sps:$4 sm:$0xff]   ;;  %v2224_v10 = vld [vmem:[%s3450_s1 + $0xa0] ss:$16 sps:$4 sm:$0xff]   ;;  %1677 = vmatprep.mubr.bf16.mxu1 %v2772_v51 }
   0x6   :  { %v2222_v9 = vld [vmem:[%s3450_s1 + $0x2a4] ss:$16 sps:$4 sm:$0xff]   ;;  %v2225_v11 = vld [vmem:[%s3450_s1 + $0x2a0] ss:$16 sps:$4 sm:$0xff]  }
   0x7   :  { %1607 = vmatpush1.bf16.msra.mxu0 %v2218_v6  ;;  %v2226_v12 = vld [vmem:[%s3450_s1 + $0x84] ss:$16 sps:$4 sm:$0xff]   ;;  %v2230_v14 = vld [vmem:[%s3450_s1 + $0x80] ss:$16 sps:$4 sm:$0xff]  }
   0x8   :  { %1648 = vmatpush1.bf16.msra.mxu1 %v2219_v7  ;;  %1608 = vmatprep.subr.bf16.mxu0 %v2220_v8  ;;  %v2228_v13 = vld [vmem:[%s3450_s1 + $0x284] ss:$16 sps:$4 sm:$0xff]   ;;  %v2231_v15 = vld [vmem:[%s3450_s1 + $0x280] ss:$16 sps:$4 sm:$0xff]   ;;  %v2832_v7 = vcombine.low %v15_v48, %v15_v48 }
   0x9   :  { %1649 = vmatprep.subr.bf16.mxu1 %v2222_v9  ;;  %v2232_v16 = vld [vmem:[%s3450_s1 + $0x64] ss:$16 sps:$4 sm:$0xff]   ;;  %v2236_v18 = vld [vmem:[%s3450_s1 + $0x60] ss:$16 sps:$4 sm:$0xff]  }
   0xa   :  { %v2234_v17 = vld [vmem:[%s3450_s1 + $0x264] ss:$16 sps:$4 sm:$0xff]   ;;  %v2237_v19 = vld [vmem:[%s3450_s1 + $0x260] ss:$16 sps:$4 sm:$0xff]  }
   0xb   :  { %1609 = vmatpush1.bf16.msra.mxu0 %v2224_v10  ;;  %v2238_v20 = vld [vmem:[%s3450_s1 + $0x44] ss:$16 sps:$4 sm:$0xff]   ;;  %v2242_v22 = vld [vmem:[%s3450_s1 + $0x40] ss:$16 sps:$4 sm:$0xff]  }
   0xc   :  { %1650 = vmatpush1.bf16.msra.mxu1 %v2225_v11  ;;  %1610 = vmatprep.subr.bf16.mxu0 %v2226_v12  ;;  %v2240_v21 = vld [vmem:[%s3450_s1 + $0x244] ss:$16 sps:$4 sm:$0xff]   ;;  %v2243_v23 = vld [vmem:[%s3450_s1 + $0x240] ss:$16 sps:$4 sm:$0xff]  }
   0xd   :  { %1651 = vmatprep.subr.bf16.mxu1 %v2228_v13  ;;  %v2244_v24 = vld [vmem:[%s3450_s1 + $0x24] ss:$16 sps:$4 sm:$0xff]   ;;  %v2248_v26 = vld [vmem:[%s3450_s1 + $0x20] ss:$16 sps:$4 sm:$0xff]  }
   0xe   :  { %v2246_v25 = vld [vmem:[%s3450_s1 + $0x224] ss:$16 sps:$4 sm:$0xff]   ;;  %v2249_v27 = vld [vmem:[%s3450_s1 + $0x220] ss:$16 sps:$4 sm:$0xff]  }
   0xf   :  { %1611 = vmatpush1.bf16.msra.mxu0 %v2230_v14  ;;  %v2250_v28 = vld [vmem:[%s3450_s1 + $0x4] ss:$16 sps:$4 sm:$0xff]   ;;  %v2254_v30 = vld [vmem:[%s3450_s1] ss:$16 sps:$4 sm:$0xff]  }
  0x10   :  { %1652 = vmatpush1.bf16.msra.mxu1 %v2231_v15  ;;  %1612 = vmatprep.subr.bf16.mxu0 %v2232_v16  ;;  %v2252_v29 = vld [vmem:[%s3450_s1 + $0x204] ss:$16 sps:$4 sm:$0xff]   ;;  %v2255_v31 = vld [vmem:[%s3450_s1 + $0x200] ss:$16 sps:$4 sm:$0xff]  }
  0x11   :  { %1653 = vmatprep.subr.bf16.mxu1 %v2234_v17  ;;  %v2256_v32 = vld [vmem:[%s3450_s1 + $0x1e4] ss:$16 sps:$4 sm:$0xff]   ;;  %v2260_v34 = vld [vmem:[%s3450_s1 + $0x1e0] ss:$16 sps:$4 sm:$0xff]  }
  0x12   :  { %v2258_v33 = vld [vmem:[%s3450_s1 + $0x3e4] ss:$16 sps:$4 sm:$0xff]   ;;  %v2261_v35 = vld [vmem:[%s3450_s1 + $0x3e0] ss:$16 sps:$4 sm:$0xff]  }
  0x13   :  { %1613 = vmatpush1.bf16.msra.mxu0 %v2236_v18  ;;  %v2262_v36 = vld [vmem:[%s3450_s1 + $0x1c4] ss:$16 sps:$4 sm:$0xff]   ;;  %v2266_v38 = vld [vmem:[%s3450_s1 + $0x1c0] ss:$16 sps:$4 sm:$0xff]  }
  0x14   :  { %1654 = vmatpush1.bf16.msra.mxu1 %v2237_v19  ;;  %1614 = vmatprep.subr.bf16.mxu0 %v2238_v20  ;;  %v2264_v37 = vld [vmem:[%s3450_s1 + $0x3c4] ss:$16 sps:$4 sm:$0xff]   ;;  %v2267_v39 = vld [vmem:[%s3450_s1 + $0x3c0] ss:$16 sps:$4 sm:$0xff]  }
  0x15   :  { %1655 = vmatprep.subr.bf16.mxu1 %v2240_v21  ;;  %v2268_v40 = vld [vmem:[%s3450_s1 + $0x1a4] ss:$16 sps:$4 sm:$0xff]   ;;  %v2272_v42 = vld [vmem:[%s3450_s1 + $0x1a0] ss:$16 sps:$4 sm:$0xff]  }
  0x16   :  { %v2270_v41 = vld [vmem:[%s3450_s1 + $0x3a4] ss:$16 sps:$4 sm:$0xff]   ;;  %v2273_v43 = vld [vmem:[%s3450_s1 + $0x3a0] ss:$16 sps:$4 sm:$0xff]  }
  0x17   :  { %1615 = vmatpush1.bf16.msra.mxu0 %v2242_v22  ;;  %v2274_v44 = vld [vmem:[%s3450_s1 + $0x184] ss:$16 sps:$4 sm:$0xff]   ;;  %v2278_v49 = vld [vmem:[%s3450_s1 + $0x180] ss:$16 sps:$4 sm:$0xff]  }
  0x18   :  { %1656 = vmatpush1.bf16.msra.mxu1 %v2243_v23  ;;  %1616 = vmatprep.subr.bf16.mxu0 %v2244_v24  ;;  %v2276_v45 = vld [vmem:[%s3450_s1 + $0x384] ss:$16 sps:$4 sm:$0xff]   ;;  %v2279_v50 = vld [vmem:[%s3450_s1 + $0x380] ss:$16 sps:$4 sm:$0xff]  }
  0x19   :  { %1657 = vmatprep.subr.bf16.mxu1 %v2246_v25  ;;  %v14_v46 = vld [vmem:[%s3451_s0] sm:$0xff] }
  0x1a   :  { %v2761_v47 = vcombine.high %v14_v46, %v14_v46  ;;  %v2280_v52 = vld [vmem:[%s3450_s1 + $0x164] ss:$16 sps:$4 sm:$0xff]   ;;  %v2284_v54 = vld [vmem:[%s3450_s1 + $0x160] ss:$16 sps:$4 sm:$0xff]   ;;  %v2830_v6 = vcombine.low %v14_v46, %v14_v46 }
  0x1b   :  { %1617 = vmatpush1.bf16.msra.mxu0 %v2248_v26  ;;  %v2282_v53 = vld [vmem:[%s3450_s1 + $0x364] ss:$16 sps:$4 sm:$0xff]   ;;  %v2285_v55 = vld [vmem:[%s3450_s1 + $0x360] ss:$16 sps:$4 sm:$0xff]  }
  0x1c   :  { %1658 = vmatpush1.bf16.msra.mxu1 %v2249_v27  ;;  %1618 = vmatprep.subr.bf16.mxu0 %v2250_v28  ;;  %v2286_v56 = vld [vmem:[%s3450_s1 + $0x144] ss:$16 sps:$4 sm:$0xff]   ;;  %v2290_v58 = vld [vmem:[%s3450_s1 + $0x140] ss:$16 sps:$4 sm:$0xff]  }
  0x1d   :  { %1659 = vmatprep.subr.bf16.mxu1 %v2252_v29  ;;  %1636 = vmatprep.mubr.bf16.mxu0 %v2761_v47  ;;  %v2288_v57 = vld [vmem:[%s3450_s1 + $0x344] ss:$16 sps:$4 sm:$0xff]   ;;  %v2291_v59 = vld [vmem:[%s3450_s1 + $0x340] ss:$16 sps:$4 sm:$0xff]  }
  0x1e   :  { %v2292_v60 = vld [vmem:[%s3450_s1 + $0x124] ss:$16 sps:$4 sm:$0xff]   ;;  %v2296_v62 = vld [vmem:[%s3450_s1 + $0x120] ss:$16 sps:$4 sm:$0xff]  }
  0x1f   :  { %1619 = vmatpush1.bf16.msra.mxu0 %v2254_v30  ;;  %v2294_v61 = vld [vmem:[%s3450_s1 + $0x324] ss:$16 sps:$4 sm:$0xff]   ;;  %v2297_v63 = vld [vmem:[%s3450_s1 + $0x320] ss:$16 sps:$4 sm:$0xff]  }
  0x20   :  { %1660 = vmatpush1.bf16.msra.mxu1 %v2255_v31  ;;  %1620 = vmatprep.subr.bf16.mxu0 %v2256_v32  ;;  %v2298_v0 = vld [vmem:[%s3450_s1 + $0x104] ss:$16 sps:$4 sm:$0xff]   ;;  %v2302_v2 = vld [vmem:[%s3450_s1 + $0x100] ss:$16 sps:$4 sm:$0xff]  }
  0x21   :  { %1661 = vmatprep.subr.bf16.mxu1 %v2258_v33  ;;  %v2300_v1 = vld [vmem:[%s3450_s1 + $0x304] ss:$16 sps:$4 sm:$0xff]   ;;  %v2303_v3 = vld [vmem:[%s3450_s1 + $0x300] ss:$16 sps:$4 sm:$0xff]   ;;  %v2916_v33 = vld [vmem:[%s3451_s0 + $0x18] sm:$0xff] }
  0x22   :  { %v2310_v4 = vld [vmem:[%s3450_s1 + $0x4e4] ss:$16 sps:$4 sm:$0xff]   ;;  %v2308_v8 = vld [vmem:[%s3450_s1 + $0x4e0] ss:$16 sps:$4 sm:$0xff]  }
  0x23   :  { %1621 = vmatpush2.bf16.msra.mxu0 %v2260_v34  ;;  %v2313_v5 = vld [vmem:[%s3450_s1 + $0x6e4] ss:$16 sps:$4 sm:$0xff]   ;;  %v2311_v9 = vld [vmem:[%s3450_s1 + $0x6e0] ss:$16 sps:$4 sm:$0xff]  }
  0x24   :  { %1662 = vmatpush2.bf16.msra.mxu1 %v2261_v35  ;;  %1622 = vmatprep.subr.bf16.mxu0 %v2262_v36  ;;  %v2316_v10 = vld [vmem:[%s3450_s1 + $0x4c4] ss:$16 sps:$4 sm:$0xff]   ;;  %v2314_v12 = vld [vmem:[%s3450_s1 + $0x4c0] ss:$16 sps:$4 sm:$0xff]  }
  0x25   :  { %1663 = vmatprep.subr.bf16.mxu1 %v2264_v37  ;;  %v2319_v11 = vld [vmem:[%s3450_s1 + $0x6c4] ss:$16 sps:$4 sm:$0xff]   ;;  %v2317_v13 = vld [vmem:[%s3450_s1 + $0x6c0] ss:$16 sps:$4 sm:$0xff]   ;;  %v2930_v37 = vcombine.high %v2916_v33, %v2916_v33 }
  0x26   :  { %v2322_v14 = vld [vmem:[%s3450_s1 + $0x4a4] ss:$16 sps:$4 sm:$0xff]   ;;  %v2320_v16 = vld [vmem:[%s3450_s1 + $0x4a0] ss:$16 sps:$4 sm:$0xff]  }
  0x27   :  { %1623 = vmatpush2.bf16.msra.mxu0 %v2266_v38  ;;  %v2325_v15 = vld [vmem:[%s3450_s1 + $0x6a4] ss:$16 sps:$4 sm:$0xff]   ;;  %v2323_v17 = vld [vmem:[%s3450_s1 + $0x6a0] ss:$16 sps:$4 sm:$0xff]  }
  0x28   :  { %1664 = vmatpush2.bf16.msra.mxu1 %v2267_v39  ;;  %1624 = vmatprep.subr.bf16.mxu0 %v2268_v40  ;;  %v2328_v18 = vld [vmem:[%s3450_s1 + $0x484] ss:$16 sps:$4 sm:$0xff]   ;;  %v2326_v20 = vld [vmem:[%s3450_s1 + $0x480] ss:$16 sps:$4 sm:$0xff]  }
  0x29   :  { %1665 = vmatprep.subr.bf16.mxu1 %v2270_v41  ;;  %v2331_v19 = vld [vmem:[%s3450_s1 + $0x684] ss:$16 sps:$4 sm:$0xff]   ;;  %v2329_v21 = vld [vmem:[%s3450_s1 + $0x680] ss:$16 sps:$4 sm:$0xff]  }
  0x2a   :  { %v2334_v22 = vld [vmem:[%s3450_s1 + $0x464] ss:$16 sps:$4 sm:$0xff]   ;;  %v2332_v24 = vld [vmem:[%s3450_s1 + $0x460] ss:$16 sps:$4 sm:$0xff]  }
  0x2b   :  { %1625 = vmatpush2.bf16.msra.mxu0 %v2272_v42  ;;  %v2337_v23 = vld [vmem:[%s3450_s1 + $0x664] ss:$16 sps:$4 sm:$0xff]   ;;  %v2335_v25 = vld [vmem:[%s3450_s1 + $0x660] ss:$16 sps:$4 sm:$0xff]  }
  0x2c   :  { %1666 = vmatpush2.bf16.msra.mxu1 %v2273_v43  ;;  %1626 = vmatprep.subr.bf16.mxu0 %v2274_v44  ;;  %v2340_v26 = vld [vmem:[%s3450_s1 + $0x444] ss:$16 sps:$4 sm:$0xff]   ;;  %v2338_v28 = vld [vmem:[%s3450_s1 + $0x440] ss:$16 sps:$4 sm:$0xff]  }
  0x2d   :  { %1667 = vmatprep.subr.bf16.mxu1 %v2276_v45  ;;  %v2343_v27 = vld [vmem:[%s3450_s1 + $0x644] ss:$16 sps:$4 sm:$0xff]   ;;  %v2341_v29 = vld [vmem:[%s3450_s1 + $0x640] ss:$16 sps:$4 sm:$0xff]  }
  0x2e   :  { %v2346_v30 = vld [vmem:[%s3450_s1 + $0x424] ss:$16 sps:$4 sm:$0xff]   ;;  %v2344_v34 = vld [vmem:[%s3450_s1 + $0x420] ss:$16 sps:$4 sm:$0xff]  }
  0x2f   :  { %1627 = vmatpush2.bf16.msra.mxu0 %v2278_v49  ;;  %v2349_v31 = vld [vmem:[%s3450_s1 + $0x624] ss:$16 sps:$4 sm:$0xff]   ;;  %v2347_v35 = vld [vmem:[%s3450_s1 + $0x620] ss:$16 sps:$4 sm:$0xff]  }
  0x30   :  { %1668 = vmatpush2.bf16.msra.mxu1 %v2279_v50  ;;  %1628 = vmatprep.subr.bf16.mxu0 %v2280_v52  ;;  %v2911_v32 = vld [vmem:[%s3451_s0 + $0x10] sm:$0xff] }
  0x31   :  { %1669 = vmatprep.subr.bf16.mxu1 %v2282_v53  ;;  %v2926_v36 = vcombine.high %v2911_v32, %v2911_v32  ;;  %v2352_v38 = vld [vmem:[%s3450_s1 + $0x404] ss:$16 sps:$4 sm:$0xff]   ;;  %v2350_v40 = vld [vmem:[%s3450_s1 + $0x400] ss:$16 sps:$4 sm:$0xff]  }
  0x32   :  { %v2355_v39 = vld [vmem:[%s3450_s1 + $0x604] ss:$16 sps:$4 sm:$0xff]   ;;  %v2353_v41 = vld [vmem:[%s3450_s1 + $0x600] ss:$16 sps:$4 sm:$0xff]  }
  0x33   :  { %1629 = vmatpush2.bf16.msra.mxu0 %v2284_v54  ;;  %v2358_v42 = vld [vmem:[%s3450_s1 + $0x5e4] ss:$16 sps:$4 sm:$0xff]   ;;  %v2356_v44 = vld [vmem:[%s3450_s1 + $0x5e0] ss:$16 sps:$4 sm:$0xff]  }
  0x34   :  { %1670 = vmatpush2.bf16.msra.mxu1 %v2285_v55  ;;  %1630 = vmatprep.subr.bf16.mxu0 %v2286_v56  ;;  %v2361_v43 = vld [vmem:[%s3450_s1 + $0x7e4] ss:$16 sps:$4 sm:$0xff]   ;;  %v2359_v45 = vld [vmem:[%s3450_s1 + $0x7e0] ss:$16 sps:$4 sm:$0xff]  }
  0x35   :  { %1671 = vmatprep.subr.bf16.mxu1 %v2288_v57  ;;  %v2364_v46 = vld [vmem:[%s3450_s1 + $0x5c4] ss:$16 sps:$4 sm:$0xff]   ;;  %v2362_v49 = vld [vmem:[%s3450_s1 + $0x5c0] ss:$16 sps:$4 sm:$0xff]  }
  0x36   :  { %v2367_v48 = vld [vmem:[%s3450_s1 + $0x7c4] ss:$16 sps:$4 sm:$0xff]   ;;  %v2365_v50 = vld [vmem:[%s3450_s1 + $0x7c0] ss:$16 sps:$4 sm:$0xff]  }
  0x37   :  { %1631 = vmatpush2.bf16.msra.mxu0 %v2290_v58  ;;  %v2370_v52 = vld [vmem:[%s3450_s1 + $0x5a4] ss:$16 sps:$4 sm:$0xff]   ;;  %v2368_v54 = vld [vmem:[%s3450_s1 + $0x5a0] ss:$16 sps:$4 sm:$0xff]  }
  0x38   :  { %1672 = vmatpush2.bf16.msra.mxu1 %v2291_v59  ;;  %1632 = vmatprep.subr.bf16.mxu0 %v2292_v60  ;;  %v2373_v53 = vld [vmem:[%s3450_s1 + $0x7a4] ss:$16 sps:$4 sm:$0xff]   ;;  %v2371_v55 = vld [vmem:[%s3450_s1 + $0x7a0] ss:$16 sps:$4 sm:$0xff]  }
  0x39   :  { %1673 = vmatprep.subr.bf16.mxu1 %v2294_v61  ;;  %v2376_v56 = vld [vmem:[%s3450_s1 + $0x584] ss:$16 sps:$4 sm:$0xff]   ;;  %v2374_v58 = vld [vmem:[%s3450_s1 + $0x580] ss:$16 sps:$4 sm:$0xff]  }
  0x3a   :  { %v2379_v57 = vld [vmem:[%s3450_s1 + $0x784] ss:$16 sps:$4 sm:$0xff]   ;;  %v2377_v59 = vld [vmem:[%s3450_s1 + $0x780] ss:$16 sps:$4 sm:$0xff]  }
  0x3b   :  { %1633 = vmatpush2.bf16.msra.mxu0 %v2296_v62  ;;  %v2382_v60 = vld [vmem:[%s3450_s1 + $0x564] ss:$16 sps:$4 sm:$0xff]   ;;  %v2380_v62 = vld [vmem:[%s3450_s1 + $0x560] ss:$16 sps:$4 sm:$0xff]  }
  0x3c   :  { %1674 = vmatpush2.bf16.msra.mxu1 %v2297_v63  ;;  %1634 = vmatprep.subr.bf16.mxu0 %v2298_v0  ;;  %v2385_v61 = vld [vmem:[%s3450_s1 + $0x764] ss:$16 sps:$4 sm:$0xff]   ;;  %v2383_v63 = vld [vmem:[%s3450_s1 + $0x760] ss:$16 sps:$4 sm:$0xff]  }
  0x3d   :  { %1675 = vmatprep.subr.bf16.mxu1 %v2300_v1  ;;  %v2388_v0 = vld [vmem:[%s3450_s1 + $0x544] ss:$16 sps:$4 sm:$0xff]  }
  0x3e   :  { %v2391_v1 = vld [vmem:[%s3450_s1 + $0x744] ss:$16 sps:$4 sm:$0xff]  }
  0x3f   :  { %1635 = vmatpush2.bf16.msra.mxu0 %v2302_v2  ;;  %v2386_v2 = vld [vmem:[%s3450_s1 + $0x540] ss:$16 sps:$4 sm:$0xff]  }
  0x40   :  { %1676 = vmatpush2.bf16.msra.mxu1 %v2303_v3  ;;  %1686 = vmatprep.subr.bf16.mxu0 %v2310_v4  ;;  %v2389_v3 = vld [vmem:[%s3450_s1 + $0x740] ss:$16 sps:$4 sm:$0xff]   ;;  %v2394_v4 = vld [vmem:[%s3450_s1 + $0x524] ss:$16 sps:$4 sm:$0xff]  }
  0x41   :  { %1727 = vmatprep.subr.bf16.mxu1 %v2313_v5  ;;  %v2397_v5 = vld [vmem:[%s3450_s1 + $0x724] ss:$16 sps:$4 sm:$0xff]  }
  0x42   :  { %1637 = vmatmul.mubr.bf16.vlgmr.msra.gmra.mxu0 %v2830_v6 }
  0x43   :  { %1678 = vmatmul.mubr.bf16.vlgmr.msra.gmra.mxu1 %v2832_v7  ;;  %1687 = vmatpush1.bf16.msra.mxu0 %v2308_v8  ;;  %v2392_v8 = vld [vmem:[%s3450_s1 + $0x520] ss:$16 sps:$4 sm:$0xff]  }
  0x44   :  { %1728 = vmatpush1.bf16.msra.mxu1 %v2311_v9  ;;  %1688 = vmatprep.subr.bf16.mxu0 %v2316_v10  ;;  %v2395_v9 = vld [vmem:[%s3450_s1 + $0x720] ss:$16 sps:$4 sm:$0xff]   ;;  %v2400_v10 = vld [vmem:[%s3450_s1 + $0x504] ss:$16 sps:$4 sm:$0xff]  }
  0x45   :  { %1729 = vmatprep.subr.bf16.mxu1 %v2319_v11  ;;  %1718 = vmatprep.mubr.bf16.mxu0 %v2926_v36  ;;  %v2403_v11 = vld [vmem:[%s3450_s1 + $0x704] ss:$16 sps:$4 sm:$0xff]  }
  0x46   :  { %1759 = vmatprep.mubr.bf16.mxu1 %v2930_v37 }
  0x47   :  { %1689 = vmatpush1.bf16.msra.mxu0 %v2314_v12  ;;  %v2398_v12 = vld [vmem:[%s3450_s1 + $0x500] ss:$16 sps:$4 sm:$0xff]  }
  0x48   :  { %1730 = vmatpush1.bf16.msra.mxu1 %v2317_v13  ;;  %1690 = vmatprep.subr.bf16.mxu0 %v2322_v14  ;;  %v2401_v13 = vld [vmem:[%s3450_s1 + $0x700] ss:$16 sps:$4 sm:$0xff]   ;;  %v2410_v14 = vld [vmem:[%s3450_s1 + $0xec] ss:$16 sps:$4 sm:$0xff]  }
  0x49   :  { %1731 = vmatprep.subr.bf16.mxu1 %v2325_v15  ;;  %v2413_v15 = vld [vmem:[%s3450_s1 + $0x2ec] ss:$16 sps:$4 sm:$0xff]  }
  0x4b   :  { %1691 = vmatpush1.bf16.msra.mxu0 %v2320_v16  ;;  %v3050_v16 = vcombine.low %v2911_v32, %v2911_v32  ;;  %v2432_v32 = vld [vmem:[%s3450_s1 + $0x68] ss:$16 sps:$4 sm:$0xff]  }
  0x4c   :  { %1732 = vmatpush1.bf16.msra.mxu1 %v2323_v17  ;;  %1692 = vmatprep.subr.bf16.mxu0 %v2328_v18  ;;  %v3054_v17 = vcombine.low %v2916_v33, %v2916_v33  ;;  %v2408_v18 = vld [vmem:[%s3450_s1 + $0xe8] ss:$16 sps:$4 sm:$0xff]  }
  0x4d   :  { %1733 = vmatprep.subr.bf16.mxu1 %v2331_v19  ;;  %v2411_v19 = vld [vmem:[%s3450_s1 + $0x2e8] ss:$16 sps:$4 sm:$0xff]  }
  0x4e   :  { %v2435_v33 = vld [vmem:[%s3450_s1 + $0x268] ss:$16 sps:$4 sm:$0xff]  }
  0x4f   :  { %1693 = vmatpush1.bf16.msra.mxu0 %v2326_v20  ;;  %v2416_v20 = vld [vmem:[%s3450_s1 + $0xcc] ss:$16 sps:$4 sm:$0xff]  }
  0x50   :  { %1734 = vmatpush1.bf16.msra.mxu1 %v2329_v21  ;;  %1694 = vmatprep.subr.bf16.mxu0 %v2334_v22  ;;  %v2419_v21 = vld [vmem:[%s3450_s1 + $0x2cc] ss:$16 sps:$4 sm:$0xff]   ;;  %v2414_v22 = vld [vmem:[%s3450_s1 + $0xc8] ss:$16 sps:$4 sm:$0xff]  }
  0x51   :  { %1735 = vmatprep.subr.bf16.mxu1 %v2337_v23  ;;  %v2417_v23 = vld [vmem:[%s3450_s1 + $0x2c8] ss:$16 sps:$4 sm:$0xff]  }
  0x53   :  { %1695 = vmatpush1.bf16.msra.mxu0 %v2332_v24  ;;  %v2422_v24 = vld [vmem:[%s3450_s1 + $0xac] ss:$16 sps:$4 sm:$0xff]  }
  0x54   :  { %1736 = vmatpush1.bf16.msra.mxu1 %v2335_v25  ;;  %1696 = vmatprep.subr.bf16.mxu0 %v2340_v26  ;;  %v2425_v25 = vld [vmem:[%s3450_s1 + $0x2ac] ss:$16 sps:$4 sm:$0xff]   ;;  %v2420_v26 = vld [vmem:[%s3450_s1 + $0xa8] ss:$16 sps:$4 sm:$0xff]  }
  0x55   :  { %1737 = vmatprep.subr.bf16.mxu1 %v2343_v27  ;;  %v2423_v27 = vld [vmem:[%s3450_s1 + $0x2a8] ss:$16 sps:$4 sm:$0xff]  }
  0x57   :  { %1697 = vmatpush1.bf16.msra.mxu0 %v2338_v28  ;;  %v2428_v28 = vld [vmem:[%s3450_s1 + $0x8c] ss:$16 sps:$4 sm:$0xff]  }
  0x58   :  { %1738 = vmatpush1.bf16.msra.mxu1 %v2341_v29  ;;  %1698 = vmatprep.subr.bf16.mxu0 %v2346_v30  ;;  %v2429_v29 = vld [vmem:[%s3450_s1 + $0x288] ss:$16 sps:$4 sm:$0xff]   ;;  %v2434_v30 = vld [vmem:[%s3450_s1 + $0x6c] ss:$16 sps:$4 sm:$0xff]  }
  0x59   :  { %1739 = vmatprep.subr.bf16.mxu1 %v2349_v31  ;;  %v2437_v31 = vld [vmem:[%s3450_s1 + $0x26c] ss:$16 sps:$4 sm:$0xff]  }
  0x5b   :  { %1699 = vmatpush1.bf16.msra.mxu0 %v2344_v34  ;;  %v2440_v34 = vld [vmem:[%s3450_s1 + $0x4c] ss:$16 sps:$4 sm:$0xff]  }
  0x5c   :  { %1740 = vmatpush1.bf16.msra.mxu1 %v2347_v35  ;;  %1700 = vmatprep.subr.bf16.mxu0 %v2352_v38  ;;  %v2443_v35 = vld [vmem:[%s3450_s1 + $0x24c] ss:$16 sps:$4 sm:$0xff]   ;;  %v2438_v38 = vld [vmem:[%s3450_s1 + $0x48] ss:$16 sps:$4 sm:$0xff]  }
  0x5d   :  { %1741 = vmatprep.subr.bf16.mxu1 %v2355_v39  ;;  %v2441_v39 = vld [vmem:[%s3450_s1 + $0x248] ss:$16 sps:$4 sm:$0xff]  }
  0x5f   :  { %1701 = vmatpush1.bf16.msra.mxu0 %v2350_v40  ;;  %v2446_v40 = vld [vmem:[%s3450_s1 + $0x2c] ss:$16 sps:$4 sm:$0xff]  }
  0x60   :  { %1742 = vmatpush1.bf16.msra.mxu1 %v2353_v41  ;;  %1702 = vmatprep.subr.bf16.mxu0 %v2358_v42  ;;  %v2449_v41 = vld [vmem:[%s3450_s1 + $0x22c] ss:$16 sps:$4 sm:$0xff]   ;;  %v2444_v42 = vld [vmem:[%s3450_s1 + $0x28] ss:$16 sps:$4 sm:$0xff]  }
  0x61   :  { %1743 = vmatprep.subr.bf16.mxu1 %v2361_v43  ;;  %v2447_v43 = vld [vmem:[%s3450_s1 + $0x228] ss:$16 sps:$4 sm:$0xff]  }
  0x63   :  { %1703 = vmatpush2.bf16.msra.mxu0 %v2356_v44  ;;  %v2452_v44 = vld [vmem:[%s3450_s1 + $0xc] ss:$16 sps:$4 sm:$0xff]  }
  0x64   :  { %1744 = vmatpush2.bf16.msra.mxu1 %v2359_v45  ;;  %1704 = vmatprep.subr.bf16.mxu0 %v2364_v46  ;;  %v2455_v45 = vld [vmem:[%s3450_s1 + $0x20c] ss:$16 sps:$4 sm:$0xff]   ;;  %v2450_v46 = vld [vmem:[%s3450_s1 + $0x8] ss:$16 sps:$4 sm:$0xff]  }
  0x65   :  { %1745 = vmatprep.subr.bf16.mxu1 %v2367_v48  ;;  %v2453_v48 = vld [vmem:[%s3450_s1 + $0x208] ss:$16 sps:$4 sm:$0xff]  }
  0x67   :  { %1705 = vmatpush2.bf16.msra.mxu0 %v2362_v49  ;;  %v2458_v49 = vld [vmem:[%s3450_s1 + $0x1ec] ss:$16 sps:$4 sm:$0xff]  }
  0x68   :  { %1746 = vmatpush2.bf16.msra.mxu1 %v2365_v50  ;;  %1706 = vmatprep.subr.bf16.mxu0 %v2370_v52  ;;  %v2461_v50 = vld [vmem:[%s3450_s1 + $0x3ec] ss:$16 sps:$4 sm:$0xff]   ;;  %v2456_v52 = vld [vmem:[%s3450_s1 + $0x1e8] ss:$16 sps:$4 sm:$0xff]  }
  0x69   :  { %1747 = vmatprep.subr.bf16.mxu1 %v2373_v53  ;;  %v2459_v53 = vld [vmem:[%s3450_s1 + $0x3e8] ss:$16 sps:$4 sm:$0xff]  }
  0x6b   :  { %1707 = vmatpush2.bf16.msra.mxu0 %v2368_v54  ;;  %v2464_v54 = vld [vmem:[%s3450_s1 + $0x1cc] ss:$16 sps:$4 sm:$0xff]  }
  0x6c   :  { %1748 = vmatpush2.bf16.msra.mxu1 %v2371_v55  ;;  %1708 = vmatprep.subr.bf16.mxu0 %v2376_v56  ;;  %v2467_v55 = vld [vmem:[%s3450_s1 + $0x3cc] ss:$16 sps:$4 sm:$0xff]   ;;  %v2462_v56 = vld [vmem:[%s3450_s1 + $0x1c8] ss:$16 sps:$4 sm:$0xff]  }
  0x6d   :  { %1749 = vmatprep.subr.bf16.mxu1 %v2379_v57  ;;  %v2465_v57 = vld [vmem:[%s3450_s1 + $0x3c8] ss:$16 sps:$4 sm:$0xff]  }
  0x6f   :  { %1709 = vmatpush2.bf16.msra.mxu0 %v2374_v58  ;;  %v2470_v58 = vld [vmem:[%s3450_s1 + $0x1ac] ss:$16 sps:$4 sm:$0xff]  }
  0x70   :  { %1750 = vmatpush2.bf16.msra.mxu1 %v2377_v59  ;;  %1710 = vmatprep.subr.bf16.mxu0 %v2382_v60  ;;  %v2473_v59 = vld [vmem:[%s3450_s1 + $0x3ac] ss:$16 sps:$4 sm:$0xff]   ;;  %v2468_v60 = vld [vmem:[%s3450_s1 + $0x1a8] ss:$16 sps:$4 sm:$0xff]  }
  0x71   :  { %1751 = vmatprep.subr.bf16.mxu1 %v2385_v61  ;;  %v2471_v61 = vld [vmem:[%s3450_s1 + $0x3a8] ss:$16 sps:$4 sm:$0xff]  }
  0x73   :  { %1711 = vmatpush2.bf16.msra.mxu0 %v2380_v62  ;;  %v2476_v62 = vld [vmem:[%s3450_s1 + $0x18c] ss:$16 sps:$4 sm:$0xff]  }
  0x74   :  { %1752 = vmatpush2.bf16.msra.mxu1 %v2383_v63  ;;  %1712 = vmatprep.subr.bf16.mxu0 %v2388_v0  ;;  %v2479_v63 = vld [vmem:[%s3450_s1 + $0x38c] ss:$16 sps:$4 sm:$0xff]   ;;  %v2474_v0 = vld [vmem:[%s3450_s1 + $0x188] ss:$16 sps:$4 sm:$0xff]  }
  0x75   :  { %1753 = vmatprep.subr.bf16.mxu1 %v2391_v1  ;;  %v2477_v1 = vld [vmem:[%s3450_s1 + $0x388] ss:$16 sps:$4 sm:$0xff]  }
  0x77   :  { %1713 = vmatpush2.bf16.msra.mxu0 %v2386_v2  ;;  %v2482_v2 = vld [vmem:[%s3450_s1 + $0x16c] ss:$16 sps:$4 sm:$0xff]  }
  0x78   :  { %1754 = vmatpush2.bf16.msra.mxu1 %v2389_v3  ;;  %1714 = vmatprep.subr.bf16.mxu0 %v2394_v4  ;;  %v2485_v3 = vld [vmem:[%s3450_s1 + $0x36c] ss:$16 sps:$4 sm:$0xff]   ;;  %v2480_v4 = vld [vmem:[%s3450_s1 + $0x168] ss:$16 sps:$4 sm:$0xff]  }
  0x79   :  { %1755 = vmatprep.subr.bf16.mxu1 %v2397_v5  ;;  %v2483_v5 = vld [vmem:[%s3450_s1 + $0x368] ss:$16 sps:$4 sm:$0xff]  }
  0x7b   :  { %1715 = vmatpush2.bf16.msra.mxu0 %v2392_v8  ;;  %v2488_v8 = vld [vmem:[%s3450_s1 + $0x14c] ss:$16 sps:$4 sm:$0xff]  }
  0x7c   :  { %1756 = vmatpush2.bf16.msra.mxu1 %v2395_v9  ;;  %1716 = vmatprep.subr.bf16.mxu0 %v2400_v10  ;;  %v2491_v9 = vld [vmem:[%s3450_s1 + $0x34c] ss:$16 sps:$4 sm:$0xff]   ;;  %v2486_v10 = vld [vmem:[%s3450_s1 + $0x148] ss:$16 sps:$4 sm:$0xff]  }
  0x7d   :  { %1757 = vmatprep.subr.bf16.mxu1 %v2403_v11  ;;  %v2489_v11 = vld [vmem:[%s3450_s1 + $0x348] ss:$16 sps:$4 sm:$0xff]  }
  0x7f   :  { %1717 = vmatpush2.bf16.msra.mxu0 %v2398_v12  ;;  %v2494_v12 = vld [vmem:[%s3450_s1 + $0x12c] ss:$16 sps:$4 sm:$0xff]  }
  0x80   :  { %1758 = vmatpush2.bf16.msra.mxu1 %v2401_v13  ;;  %1768 = vmatprep.subr.bf16.mxu0 %v2410_v14  ;;  %v2497_v13 = vld [vmem:[%s3450_s1 + $0x32c] ss:$16 sps:$4 sm:$0xff]   ;;  %v2492_v14 = vld [vmem:[%s3450_s1 + $0x128] ss:$16 sps:$4 sm:$0xff]  }
  0x81   :  { %1809 = vmatprep.subr.bf16.mxu1 %v2413_v15  ;;  %v2495_v15 = vld [vmem:[%s3450_s1 + $0x328] ss:$16 sps:$4 sm:$0xff]  }
  0x82   :  { %1719 = vmatmul.mubr.bf16.vlgmr.msra.gmra.mxu0 %v3050_v16 }
  0x83   :  { %1760 = vmatmul.mubr.bf16.vlgmr.msra.gmra.mxu1 %v3054_v17  ;;  %1769 = vmatpush1.bf16.msra.mxu0 %v2408_v18  ;;  %v2500_v18 = vld [vmem:[%s3450_s1 + $0x10c] ss:$16 sps:$4 sm:$0xff]  }
  0x84   :  { %1810 = vmatpush1.bf16.msra.mxu1 %v2411_v19  ;;  %1770 = vmatprep.subr.bf16.mxu0 %v2416_v20  ;;  %v2503_v19 = vld [vmem:[%s3450_s1 + $0x30c] ss:$16 sps:$4 sm:$0xff]   ;;  %v2498_v20 = vld [vmem:[%s3450_s1 + $0x108] ss:$16 sps:$4 sm:$0xff]  }
  0x85   :  { %1811 = vmatprep.subr.bf16.mxu1 %v2419_v21  ;;  %1800 = vmatprep.mubr.bf16.mxu0 %v2761_v47  ;;  %v2431_v47 = vld [vmem:[%s3450_s1 + $0x28c] ss:$16 sps:$4 sm:$0xff]   ;;  %v2501_v21 = vld [vmem:[%s3450_s1 + $0x308] ss:$16 sps:$4 sm:$0xff]  }
  0x86   :  { %1841 = vmatprep.mubr.bf16.mxu1 %v2772_v51  ;;  %v2426_v51 = vld [vmem:[%s3450_s1 + $0x88] ss:$16 sps:$4 sm:$0xff]  }
  0x87   :  { %1771 = vmatpush1.bf16.msra.mxu0 %v2414_v22  ;;  %v2506_v22 = vld [vmem:[%s3450_s1 + $0x4ec] ss:$16 sps:$4 sm:$0xff]  }
  0x88   :  { %1812 = vmatpush1.bf16.msra.mxu1 %v2417_v23  ;;  %1772 = vmatprep.subr.bf16.mxu0 %v2422_v24  ;;  %v2509_v23 = vld [vmem:[%s3450_s1 + $0x6ec] ss:$16 sps:$4 sm:$0xff]   ;;  %v2504_v24 = vld [vmem:[%s3450_s1 + $0x4e8] ss:$16 sps:$4 sm:$0xff]  }
  0x89   :  { %1813 = vmatprep.subr.bf16.mxu1 %v2425_v25  ;;  %v2507_v25 = vld [vmem:[%s3450_s1 + $0x6e8] ss:$16 sps:$4 sm:$0xff]  }
  0x8b   :  { %1773 = vmatpush1.bf16.msra.mxu0 %v2420_v26  ;;  %v2512_v26 = vld [vmem:[%s3450_s1 + $0x4cc] ss:$16 sps:$4 sm:$0xff]  }
  0x8c   :  { %1814 = vmatpush1.bf16.msra.mxu1 %v2423_v27  ;;  %1774 = vmatprep.subr.bf16.mxu0 %v2428_v28  ;;  %v2515_v27 = vld [vmem:[%s3450_s1 + $0x6cc] ss:$16 sps:$4 sm:$0xff]   ;;  %v2510_v28 = vld [vmem:[%s3450_s1 + $0x4c8] ss:$16 sps:$4 sm:$0xff]  }
  0x8d   :  { %1815 = vmatprep.subr.bf16.mxu1 %v2431_v47  ;;  %v2513_v47 = vld [vmem:[%s3450_s1 + $0x6c8] ss:$16 sps:$4 sm:$0xff]  }
  0x8f   :  { %1775 = vmatpush1.bf16.msra.mxu0 %v2426_v51  ;;  %v2518_v51 = vld [vmem:[%s3450_s1 + $0x4ac] ss:$16 sps:$4 sm:$0xff]  }
  0x90   :  { %1816 = vmatpush1.bf16.msra.mxu1 %v2429_v29  ;;  %1776 = vmatprep.subr.bf16.mxu0 %v2434_v30  ;;  %v2519_v29 = vld [vmem:[%s3450_s1 + $0x6a8] ss:$16 sps:$4 sm:$0xff]   ;;  %v2524_v30 = vld [vmem:[%s3450_s1 + $0x48c] ss:$16 sps:$4 sm:$0xff]  }
  0x91   :  { %1817 = vmatprep.subr.bf16.mxu1 %v2437_v31  ;;  %v2525_v31 = vld [vmem:[%s3450_s1 + $0x688] ss:$16 sps:$4 sm:$0xff]  }
  0x93   :  { %1777 = vmatpush1.bf16.msra.mxu0 %v2432_v32  ;;  %v2530_v32 = vld [vmem:[%s3450_s1 + $0x46c] ss:$16 sps:$4 sm:$0xff]  }
  0x94   :  { %1818 = vmatpush1.bf16.msra.mxu1 %v2435_v33  ;;  %1778 = vmatprep.subr.bf16.mxu0 %v2440_v34  ;;  %v2533_v33 = vld [vmem:[%s3450_s1 + $0x66c] ss:$16 sps:$4 sm:$0xff]   ;;  %v2528_v34 = vld [vmem:[%s3450_s1 + $0x468] ss:$16 sps:$4 sm:$0xff]  }
  0x95   :  { %1819 = vmatprep.subr.bf16.mxu1 %v2443_v35  ;;  %v2531_v35 = vld [vmem:[%s3450_s1 + $0x668] ss:$16 sps:$4 sm:$0xff]  }
  0x97   :  { %1779 = vmatpush1.bf16.msra.mxu0 %v2438_v38  ;;  %v2536_v38 = vld [vmem:[%s3450_s1 + $0x44c] ss:$16 sps:$4 sm:$0xff]  }
  0x98   :  { %1820 = vmatpush1.bf16.msra.mxu1 %v2441_v39  ;;  %1780 = vmatprep.subr.bf16.mxu0 %v2446_v40  ;;  %v2539_v39 = vld [vmem:[%s3450_s1 + $0x64c] ss:$16 sps:$4 sm:$0xff]   ;;  %v2534_v40 = vld [vmem:[%s3450_s1 + $0x448] ss:$16 sps:$4 sm:$0xff]  }
  0x99   :  { %1821 = vmatprep.subr.bf16.mxu1 %v2449_v41  ;;  %v2537_v41 = vld [vmem:[%s3450_s1 + $0x648] ss:$16 sps:$4 sm:$0xff]  }
  0x9b   :  { %1781 = vmatpush1.bf16.msra.mxu0 %v2444_v42  ;;  %v2542_v42 = vld [vmem:[%s3450_s1 + $0x42c] ss:$16 sps:$4 sm:$0xff]  }
  0x9c   :  { %1822 = vmatpush1.bf16.msra.mxu1 %v2447_v43  ;;  %1782 = vmatprep.subr.bf16.mxu0 %v2452_v44  ;;  %v2545_v43 = vld [vmem:[%s3450_s1 + $0x62c] ss:$16 sps:$4 sm:$0xff]   ;;  %v2540_v44 = vld [vmem:[%s3450_s1 + $0x428] ss:$16 sps:$4 sm:$0xff]  }
  0x9d   :  { %1823 = vmatprep.subr.bf16.mxu1 %v2455_v45  ;;  %v2543_v45 = vld [vmem:[%s3450_s1 + $0x628] ss:$16 sps:$4 sm:$0xff]  }
  0x9f   :  { %1783 = vmatpush1.bf16.msra.mxu0 %v2450_v46  ;;  %v2548_v46 = vld [vmem:[%s3450_s1 + $0x40c] ss:$16 sps:$4 sm:$0xff]  }
  0xa0   :  { %1824 = vmatpush1.bf16.msra.mxu1 %v2453_v48  ;;  %1784 = vmatprep.subr.bf16.mxu0 %v2458_v49  ;;  %v2551_v48 = vld [vmem:[%s3450_s1 + $0x60c] ss:$16 sps:$4 sm:$0xff]   ;;  %v2546_v49 = vld [vmem:[%s3450_s1 + $0x408] ss:$16 sps:$4 sm:$0xff]  }
  0xa1   :  { %1825 = vmatprep.subr.bf16.mxu1 %v2461_v50  ;;  %v2549_v50 = vld [vmem:[%s3450_s1 + $0x608] ss:$16 sps:$4 sm:$0xff]  }
  0xa3   :  { %1785 = vmatpush2.bf16.msra.mxu0 %v2456_v52  ;;  %v2554_v52 = vld [vmem:[%s3450_s1 + $0x5ec] ss:$16 sps:$4 sm:$0xff]  }
  0xa4   :  { %1826 = vmatpush2.bf16.msra.mxu1 %v2459_v53  ;;  %1786 = vmatprep.subr.bf16.mxu0 %v2464_v54  ;;  %v2557_v53 = vld [vmem:[%s3450_s1 + $0x7ec] ss:$16 sps:$4 sm:$0xff]   ;;  %v2552_v54 = vld [vmem:[%s3450_s1 + $0x5e8] ss:$16 sps:$4 sm:$0xff]  }
  0xa5   :  { %1827 = vmatprep.subr.bf16.mxu1 %v2467_v55  ;;  %v2555_v55 = vld [vmem:[%s3450_s1 + $0x7e8] ss:$16 sps:$4 sm:$0xff]  }
  0xa7   :  { %1787 = vmatpush2.bf16.msra.mxu0 %v2462_v56  ;;  %v2560_v56 = vld [vmem:[%s3450_s1 + $0x5cc] ss:$16 sps:$4 sm:$0xff]  }
  0xa8   :  { %1828 = vmatpush2.bf16.msra.mxu1 %v2465_v57  ;;  %1788 = vmatprep.subr.bf16.mxu0 %v2470_v58  ;;  %v2563_v57 = vld [vmem:[%s3450_s1 + $0x7cc] ss:$16 sps:$4 sm:$0xff]   ;;  %v2558_v58 = vld [vmem:[%s3450_s1 + $0x5c8] ss:$16 sps:$4 sm:$0xff]  }
  0xa9   :  { %1829 = vmatprep.subr.bf16.mxu1 %v2473_v59  ;;  %v2561_v59 = vld [vmem:[%s3450_s1 + $0x7c8] ss:$16 sps:$4 sm:$0xff]  }
  0xab   :  { %1789 = vmatpush2.bf16.msra.mxu0 %v2468_v60  ;;  %v2566_v60 = vld [vmem:[%s3450_s1 + $0x5ac] ss:$16 sps:$4 sm:$0xff]  }
  0xac   :  { %1830 = vmatpush2.bf16.msra.mxu1 %v2471_v61  ;;  %1790 = vmatprep.subr.bf16.mxu0 %v2476_v62  ;;  %v2569_v61 = vld [vmem:[%s3450_s1 + $0x7ac] ss:$16 sps:$4 sm:$0xff]   ;;  %v2564_v62 = vld [vmem:[%s3450_s1 + $0x5a8] ss:$16 sps:$4 sm:$0xff]  }
  0xad   :  { %1831 = vmatprep.subr.bf16.mxu1 %v2479_v63  ;;  %v2567_v63 = vld [vmem:[%s3450_s1 + $0x7a8] ss:$16 sps:$4 sm:$0xff]  }
  0xaf   :  { %1791 = vmatpush2.bf16.msra.mxu0 %v2474_v0  ;;  %v2572_v0 = vld [vmem:[%s3450_s1 + $0x58c] ss:$16 sps:$4 sm:$0xff]  }
  0xb0   :  { %1832 = vmatpush2.bf16.msra.mxu1 %v2477_v1  ;;  %1792 = vmatprep.subr.bf16.mxu0 %v2482_v2  ;;  %v2575_v1 = vld [vmem:[%s3450_s1 + $0x78c] ss:$16 sps:$4 sm:$0xff]   ;;  %v2570_v2 = vld [vmem:[%s3450_s1 + $0x588] ss:$16 sps:$4 sm:$0xff]  }
  0xb1   :  { %1833 = vmatprep.subr.bf16.mxu1 %v2485_v3  ;;  %v2573_v3 = vld [vmem:[%s3450_s1 + $0x788] ss:$16 sps:$4 sm:$0xff]  }
  0xb3   :  { %1793 = vmatpush2.bf16.msra.mxu0 %v2480_v4  ;;  %v2578_v4 = vld [vmem:[%s3450_s1 + $0x56c] ss:$16 sps:$4 sm:$0xff]  }
  0xb4   :  { %1834 = vmatpush2.bf16.msra.mxu1 %v2483_v5  ;;  %1794 = vmatprep.subr.bf16.mxu0 %v2488_v8  ;;  %v2581_v5 = vld [vmem:[%s3450_s1 + $0x76c] ss:$16 sps:$4 sm:$0xff]   ;;  %v2576_v8 = vld [vmem:[%s3450_s1 + $0x568] ss:$16 sps:$4 sm:$0xff]  }
  0xb5   :  { %1835 = vmatprep.subr.bf16.mxu1 %v2491_v9  ;;  %v2579_v9 = vld [vmem:[%s3450_s1 + $0x768] ss:$16 sps:$4 sm:$0xff]  }
  0xb7   :  { %1795 = vmatpush2.bf16.msra.mxu0 %v2486_v10  ;;  %v2584_v10 = vld [vmem:[%s3450_s1 + $0x54c] ss:$16 sps:$4 sm:$0xff]  }
  0xb8   :  { %1836 = vmatpush2.bf16.msra.mxu1 %v2489_v11  ;;  %1796 = vmatprep.subr.bf16.mxu0 %v2494_v12  ;;  %v2587_v11 = vld [vmem:[%s3450_s1 + $0x74c] ss:$16 sps:$4 sm:$0xff]   ;;  %v2582_v12 = vld [vmem:[%s3450_s1 + $0x548] ss:$16 sps:$4 sm:$0xff]  }
  0xb9   :  { %1837 = vmatprep.subr.bf16.mxu1 %v2497_v13  ;;  %v2585_v13 = vld [vmem:[%s3450_s1 + $0x748] ss:$16 sps:$4 sm:$0xff]  }
  0xbb   :  { %1797 = vmatpush2.bf16.msra.mxu0 %v2492_v14  ;;  %v276_v14 = vlaneseq }
  0xbc   :  { %1838 = vmatpush2.bf16.msra.mxu1 %v2495_v15  ;;  %1798 = vmatprep.subr.bf16.mxu0 %v2500_v18  ;;  %v2590_v15 = vld [vmem:[%s3450_s1 + $0x52c] ss:$16 sps:$4 sm:$0xff]  }
  0xbd   :  { %1839 = vmatprep.subr.bf16.mxu1 %v2503_v19  ;;  %v2593_v18 = vld [vmem:[%s3450_s1 + $0x72c] ss:$16 sps:$4 sm:$0xff]   ;;  %v2588_v19 = vld [vmem:[%s3450_s1 + $0x528] ss:$16 sps:$4 sm:$0xff]  }
  0xbf   :  { %1799 = vmatpush2.bf16.msra.mxu0 %v2498_v20  ;;  %v2591_v20 = vld [vmem:[%s3450_s1 + $0x728] ss:$16 sps:$4 sm:$0xff]  }
  0xc0   :  { %1840 = vmatpush2.bf16.msra.mxu1 %v2501_v21  ;;  %1850 = vmatprep.subr.bf16.mxu0 %v2506_v22  ;;  %v277_v21 = vshrl.u32 %v276_v14, 7  ;;  %v2596_v22 = vld [vmem:[%s3450_s1 + $0x50c] ss:$16 sps:$4 sm:$0xff]  }
  0xc1   :  { %1891 = vmatprep.subr.bf16.mxu1 %v2509_v23  ;;  %v2599_v23 = vld [vmem:[%s3450_s1 + $0x70c] ss:$16 sps:$4 sm:$0xff]  }
  0xc2   :  { %1801 = vmatmul.mubr.bf16.vlgmr.msra.gmra.mxu0 %v2830_v6  ;;  %v2521_v6 = vld [vmem:[%s3450_s1 + $0x6ac] ss:$16 sps:$4 sm:$0xff]  }
  0xc3   :  { %1842 = vmatmul.mubr.bf16.vlgmr.msra.gmra.mxu1 %v2832_v7  ;;  %1851 = vmatpush1.bf16.msra.mxu0 %v2504_v24  ;;  %v2516_v7 = vld [vmem:[%s3450_s1 + $0x4a8] ss:$16 sps:$4 sm:$0xff]  }
  0xc4   :  { %1892 = vmatpush1.bf16.msra.mxu1 %v2507_v25  ;;  %1852 = vmatprep.subr.bf16.mxu0 %v2512_v26  ;;  %v2594_v24 = vld [vmem:[%s3450_s1 + $0x508] ss:$16 sps:$4 sm:$0xff]   ;;  %v278_v26 = vsub.s32 0, %v277_v21 }
  0xc5   :  { %1893 = vmatprep.subr.bf16.mxu1 %v2515_v27  ;;  %1882 = vmatprep.mubr.bf16.mxu0 %v2926_v36  ;;  %v2527_v36 = vld [vmem:[%s3450_s1 + $0x68c] ss:$16 sps:$4 sm:$0xff]   ;;  %v2597_v25 = vld [vmem:[%s3450_s1 + $0x708] ss:$16 sps:$4 sm:$0xff]   ;;  %v274_v27 = vld [vmem:[%s3452_s2] sm:$0xf] }
  0xc6   :  { %1923 = vmatprep.mubr.bf16.mxu1 %v2930_v37  ;;  %v2522_v37 = vld [vmem:[%s3450_s1 + $0x488] ss:$16 sps:$4 sm:$0xff]  }
  0xc7   :  { %1853 = vmatpush1.bf16.msra.mxu0 %v2510_v28  ;;  %v282_v28 = vsub.s32 1, %v277_v21 }
  0xc8   :  { %1894 = vmatpush1.bf16.msra.mxu1 %v2513_v47  ;;  %1854 = vmatprep.subr.bf16.mxu0 %v2518_v51  ;;  %v279_v47 = vrot.slane %v274_v27, %v278_v26 }
  0xc9   :  { %1895 = vmatprep.subr.bf16.mxu1 %v2521_v6  ;;  %v283_v51 = vrot.slane %v274_v27, %v282_v28 }
  0xcb   :  { %1855 = vmatpush1.bf16.msra.mxu0 %v2516_v7 }
  0xcc   :  { %1896 = vmatpush1.bf16.msra.mxu1 %v2519_v29  ;;  %1856 = vmatprep.subr.bf16.mxu0 %v2524_v30 }
  0xcd   :  { %1897 = vmatprep.subr.bf16.mxu1 %v2527_v36 }
  0xcf   :  { %1857 = vmatpush1.bf16.msra.mxu0 %v2522_v37 }
  0xd0   :  { %1898 = vmatpush1.bf16.msra.mxu1 %v2525_v31  ;;  %1858 = vmatprep.subr.bf16.mxu0 %v2530_v32 }
  0xd1   :  { %1899 = vmatprep.subr.bf16.mxu1 %v2533_v33 }
  0xd3   :  { %1859 = vmatpush1.bf16.msra.mxu0 %v2528_v34 }
  0xd4   :  { %1900 = vmatpush1.bf16.msra.mxu1 %v2531_v35  ;;  %1860 = vmatprep.subr.bf16.mxu0 %v2536_v38 }
  0xd5   :  { %1901 = vmatprep.subr.bf16.mxu1 %v2539_v39 }
  0xd7   :  { %1861 = vmatpush1.bf16.msra.mxu0 %v2534_v40 }
  0xd8   :  { %1902 = vmatpush1.bf16.msra.mxu1 %v2537_v41  ;;  %1862 = vmatprep.subr.bf16.mxu0 %v2542_v42 }
  0xd9   :  { %1903 = vmatprep.subr.bf16.mxu1 %v2545_v43 }
  0xdb   :  { %1863 = vmatpush1.bf16.msra.mxu0 %v2540_v44 }
  0xdc   :  { %1904 = vmatpush1.bf16.msra.mxu1 %v2543_v45  ;;  %1864 = vmatprep.subr.bf16.mxu0 %v2548_v46 }
  0xdd   :  { %1905 = vmatprep.subr.bf16.mxu1 %v2551_v48 }
  0xdf   :  { %1865 = vmatpush1.bf16.msra.mxu0 %v2546_v49 }
  0xe0   :  { %1906 = vmatpush1.bf16.msra.mxu1 %v2549_v50  ;;  %1866 = vmatprep.subr.bf16.mxu0 %v2554_v52 }
  0xe1   :  { %1907 = vmatprep.subr.bf16.mxu1 %v2557_v53 }
  0xe3   :  { %1867 = vmatpush2.bf16.msra.mxu0 %v2552_v54 }
  0xe4   :  { %1908 = vmatpush2.bf16.msra.mxu1 %v2555_v55  ;;  %1868 = vmatprep.subr.bf16.mxu0 %v2560_v56 }
  0xe5   :  { %1909 = vmatprep.subr.bf16.mxu1 %v2563_v57 }
  0xe7   :  { %1869 = vmatpush2.bf16.msra.mxu0 %v2558_v58 }
  0xe8   :  { %1910 = vmatpush2.bf16.msra.mxu1 %v2561_v59  ;;  %1870 = vmatprep.subr.bf16.mxu0 %v2566_v60 }
  0xe9   :  { %1911 = vmatprep.subr.bf16.mxu1 %v2569_v61 }
  0xeb   :  { %1871 = vmatpush2.bf16.msra.mxu0 %v2564_v62  ;;  %v286_v62 = vsub.s32 2, %v277_v21 }
  0xec   :  { %1912 = vmatpush2.bf16.msra.mxu1 %v2567_v63  ;;  %1872 = vmatprep.subr.bf16.mxu0 %v2572_v0  ;;  %v290_v63 = vsub.s32 3, %v277_v21 }
  0xed   :  { %1913 = vmatprep.subr.bf16.mxu1 %v2575_v1  ;;  %v287_v0 = vrot.slane %v274_v27, %v286_v62 }
  0xee   :  { %v291_v1 = vrot.slane %v274_v27, %v290_v63 }
  0xef   :  { %1873 = vmatpush2.bf16.msra.mxu0 %v2570_v2 }
  0xf0   :  { %1914 = vmatpush2.bf16.msra.mxu1 %v2573_v3  ;;  %1874 = vmatprep.subr.bf16.mxu0 %v2578_v4 }
  0xf1   :  { %1915 = vmatprep.subr.bf16.mxu1 %v2581_v5 }
  0xf3   :  { %1875 = vmatpush2.bf16.msra.mxu0 %v2576_v8 }
  0xf4   :  { %1916 = vmatpush2.bf16.msra.mxu1 %v2579_v9  ;;  %1876 = vmatprep.subr.bf16.mxu0 %v2584_v10 }
  0xf5   :  { %1917 = vmatprep.subr.bf16.mxu1 %v2587_v11 }
  0xf7   :  { %1877 = vmatpush2.bf16.msra.mxu0 %v2582_v12 }
  0xf8   :  { %1918 = vmatpush2.bf16.msra.mxu1 %v2585_v13  ;;  %1878 = vmatprep.subr.bf16.mxu0 %v2590_v15 }
  0xf9   :  { %1919 = vmatprep.subr.bf16.mxu1 %v2593_v18 }
  0xfb   :  { %1879 = vmatpush2.bf16.msra.mxu0 %v2588_v19 }
  0xfc   :  { %1920 = vmatpush2.bf16.msra.mxu1 %v2591_v20  ;;  %1880 = vmatprep.subr.bf16.mxu0 %v2596_v22 }
  0xfd   :  { %1921 = vmatprep.subr.bf16.mxu1 %v2599_v23 }
  0xff   :  { %1881 = vmatpush2.bf16.msra.mxu0 %v2594_v24 }
 0x100   :  { %1922 = vmatpush2.bf16.msra.mxu1 %v2597_v25 }
 0x102   :  { %v1638_v6 = vpop.f32.mrf.mxu0  ;;  %1883 = vmatmul.mubr.bf16.vlgmr.msra.gmra.mxu0 %v3050_v16 }
 0x103   :  { %v1679_v7 = vpop.f32.mrf.mxu1  ;;  %1924 = vmatmul.mubr.bf16.vlgmr.msra.gmra.mxu1 %v3054_v17  ;;  %v1639_v29 = vadd.f32 %v1638_v6, %v279_v47 }
 0x104   :  { %v1640_v30 = vpop.f32.mrf.mxu0 }
 0x105   :  { %v1681_v36 = vpop.f32.mrf.mxu1  ;;  %v1680_v37 = vadd.f32 %v1679_v7, %v1639_v29  ;;  %v1641_v31 = vadd.f32 %v1640_v30, %v283_v51 }
 0x106   :  { %v1642_v32 = vpop.f32.mrf.mxu0 }
 0x107   :  { %v1683_v33 = vpop.f32.mrf.mxu1  ;;  %v1682_v34 = vadd.f32 %v1681_v36, %v1641_v31 }
 0x108   :  { %v1643_v35 = vpop.f32.mrf.mxu0 }
 0x109   :  { %v1684_v38 = vpop.f32.mrf.mxu1 }
 0x142   :  { %v1720_v39 = vpop.f32.mrf.mxu0 }
 0x143   :  { %v1761_v40 = vpop.f32.mrf.mxu1  ;;  %v1721_v41 = vadd.f32 %v1720_v39, %v1680_v37 }
 0x144   :  { %v1722_v42 = vpop.f32.mrf.mxu0 }
 0x145   :  { %v1763_v43 = vpop.f32.mrf.mxu1  ;;  %v1762_v44 = vadd.f32 %v1761_v40, %v1721_v41  ;;  %v1723_v45 = vadd.f32 %v1722_v42, %v1682_v34 }
 0x146   :  { %v1724_v16 = vpop.f32.mrf.mxu0 }
 0x147   :  { %v1765_v46 = vpop.f32.mrf.mxu1  ;;  %v1764_v17 = vadd.f32 %v1763_v43, %v1723_v45  ;;  %v1932_v50 = vmax.f32 %v1762_v44, 0.0 }
 0x148   :  { %v1725_v48 = vpop.f32.mrf.mxu0 }
 0x149   :  { %v1766_v49 = vpop.f32.mrf.mxu1  ;;  %v1933_v52 = vmax.f32 %v1764_v17, 0.0 }
 0x14b   :  { %v1936_v53 = vmax.f32 %v1932_v50, %v1933_v52 }
 0x182   :  { %v1802_v54 = vpop.f32.mrf.mxu0 }
 0x183   :  { %v1843_v55 = vpop.f32.mrf.mxu1  ;;  %v1803_v2 = vadd.f32 %v1802_v54, %v287_v0 }
 0x184   :  { %v1804_v56 = vpop.f32.mrf.mxu0 }
 0x185   :  { %v1845_v57 = vpop.f32.mrf.mxu1  ;;  %v1805_v3 = vadd.f32 %v1804_v56, %v291_v1  ;;  %v1844_v4 = vadd.f32 %v1843_v55, %v1803_v2 }
 0x186   :  { %v1806_v58 = vpop.f32.mrf.mxu0 }
 0x187   :  { %v1847_v59 = vpop.f32.mrf.mxu1  ;;  %v1846_v9 = vadd.f32 %v1845_v57, %v1805_v3 }
 0x188   :  { %v1807_v60 = vpop.f32.mrf.mxu0 }
 0x189   :  { %v1848_v61 = vpop.f32.mrf.mxu1 }
 0x1c2   :  { %v1884_v5 = vpop.f32.mrf.mxu0 }
 0x1c3   :  { %v1925_v8 = vpop.f32.mrf.mxu1  ;;  %v1885_v10 = vadd.f32 %v1884_v5, %v1844_v4 }
 0x1c4   :  { %v1886_v11 = vpop.f32.mrf.mxu0 }
 0x1c5   :  { %v1927_v12 = vpop.f32.mrf.mxu1  ;;  %v1926_v13 = vadd.f32 %v1925_v8, %v1885_v10  ;;  %v1887_v14 = vadd.f32 %v1886_v11, %v1846_v9 }
 0x1c6   :  { %v1888_v15 = vpop.f32.mrf.mxu0 }
 0x1c7   :  { %v1929_v18 = vpop.f32.mrf.mxu1  ;;  %v1934_v19 = vmax.f32 %v1926_v13, 0.0  ;;  %v1928_v20 = vadd.f32 %v1927_v12, %v1887_v14 }
 0x1c8   :  { %v1889_v22 = vpop.f32.mrf.mxu0 }
 0x1c9   :  { %v1930_v23 = vpop.f32.mrf.mxu1  ;;  %v1937_v21 = vmax.f32 %v1936_v53, %v1934_v19  ;;  %v1935_v24 = vmax.f32 %v1928_v20, 0.0 }
 0x1cb   :  { %v1938_v25 = vmax.f32 %v1937_v21, %v1935_v24 }
 0x1cd   :  { %1939 = vst [vmem:[%s3453_s3] sm:$0xff] %v1938_v25 }

// kernel: model_forward.10
= control target key start
LH: loop header
LB: loop body
LE: loop exit
PB: predicated region body
PF: predicated region fallthrough
CT: control target
= control target key end

     0   :  { %s354_s1 = inlined_call_operand.vmem [shape: bf16[128,128], index: 1, kind: input, shape index: {}]   ;;  %s355_s0 = inlined_call_operand.vmem [shape: bf16[56,128], index: 0, kind: input, shape index: {}]   ;;  %s356_s2 = inlined_call_operand.vmem [shape: f32[1,128], index: 2, kind: input, shape index: {}]   ;;  %s357_s3 = inlined_call_operand.vmem [shape: f32[56,128], index: 3, kind: output, shape index: {}]  }
   0x1   :  { %v262_v0 = vld [vmem:[%s354_s1 + $0x38] sm:$0xff]   ;;  %v263_v1 = vld [vmem:[%s354_s1 + $0x30] sm:$0xff]   ;;  %v264_v2 = vld [vmem:[%s354_s1 + $0x28] sm:$0xff]  }
   0x2   :  { %222 = vmatprep.subr.bf16.mxu0 %v262_v0  ;;  %246 = vmatprep.subr.bf16.mxu1 %v262_v0  ;;  %v265_v3 = vld [vmem:[%s354_s1 + $0x20] sm:$0xff]   ;;  %v271_v5 = vld [vmem:[%s355_s0 + $0x10] sm:$0xff]   ;;  %v266_v6 = vld [vmem:[%s354_s1 + $0x18] sm:$0xff]  }
   0x3   :  { %223 = vmatpush3.bf16.msra.mxu0 %v262_v0  ;;  %254 = vmatpush3.bf16.msra.mxu1 %v262_v0  ;;  %v270_v4 = vld [vmem:[%s355_s0] sm:$0xff]   ;;  %v267_v7 = vld [vmem:[%s354_s1 + $0x10] sm:$0xff]   ;;  %v268_v8 = vld [vmem:[%s354_s1 + $0x8] sm:$0xff]  }
   0x4   :  { %224 = vmatprep.subr.bf16.mxu0 %v263_v1  ;;  %247 = vmatprep.subr.bf16.mxu1 %v263_v1  ;;  %v269_v9 = vld [vmem:[%s354_s1] sm:$0xff]   ;;  %v272_v10 = vld [vmem:[%s355_s0 + $0x8] sm:$0xff]   ;;  %v273_v11 = vld [vmem:[%s355_s0 + $0x18] ss:$0 sps:$4 sm:$0xff]  }
   0x5   :  { %238 = vmatprep.mubr.bf16.mxu0 %v270_v4  ;;  %242 = vmatprep.mubr.bf16.mxu1 %v271_v5  ;;  %v197_v12 = vld [vmem:[%s356_s2] ss:$0 sm:$0xff] }
   0x7   :  { %225 = vmatpush3.bf16.msra.mxu0 %v263_v1  ;;  %255 = vmatpush3.bf16.msra.mxu1 %v263_v1 }
   0x8   :  { %226 = vmatprep.subr.bf16.mxu0 %v264_v2  ;;  %248 = vmatprep.subr.bf16.mxu1 %v264_v2 }
   0xb   :  { %227 = vmatpush3.bf16.msra.mxu0 %v264_v2  ;;  %256 = vmatpush3.bf16.msra.mxu1 %v264_v2 }
   0xc   :  { %228 = vmatprep.subr.bf16.mxu0 %v265_v3  ;;  %249 = vmatprep.subr.bf16.mxu1 %v265_v3 }
   0xf   :  { %229 = vmatpush3.bf16.msra.mxu0 %v265_v3  ;;  %257 = vmatpush3.bf16.msra.mxu1 %v265_v3 }
  0x10   :  { %230 = vmatprep.subr.bf16.mxu0 %v266_v6  ;;  %250 = vmatprep.subr.bf16.mxu1 %v266_v6 }
  0x13   :  { %231 = vmatpush3.bf16.msra.mxu0 %v266_v6  ;;  %258 = vmatpush3.bf16.msra.mxu1 %v266_v6 }
  0x14   :  { %232 = vmatprep.subr.bf16.mxu0 %v267_v7  ;;  %251 = vmatprep.subr.bf16.mxu1 %v267_v7 }
  0x17   :  { %233 = vmatpush3.bf16.msra.mxu0 %v267_v7  ;;  %259 = vmatpush3.bf16.msra.mxu1 %v267_v7 }
  0x18   :  { %234 = vmatprep.subr.bf16.mxu0 %v268_v8  ;;  %252 = vmatprep.subr.bf16.mxu1 %v268_v8 }
  0x1b   :  { %235 = vmatpush3.bf16.msra.mxu0 %v268_v8  ;;  %260 = vmatpush3.bf16.msra.mxu1 %v268_v8 }
  0x1c   :  { %236 = vmatprep.subr.bf16.mxu0 %v269_v9  ;;  %253 = vmatprep.subr.bf16.mxu1 %v269_v9 }
  0x1f   :  { %237 = vmatpush3.bf16.msra.mxu0 %v269_v9  ;;  %261 = vmatpush3.bf16.msra.mxu1 %v269_v9 }
  0x22   :  { %239 = vmatmul.mubr.bf16.vlgmr.msra.gmra.mxu0 %v272_v10  ;;  %243 = vmatmul.mubr.bf16.vlgmr.msra.gmra.mxu1 %v273_v11 }
  0xe2   :  { %v240_v13 = vpop.f32.mrf.mxu0  ;;  %v244_v14 = vpop.f32.mrf.mxu1 }
  0xe3   :  { %v158_v15 = vadd.f32 %v240_v13, %v197_v12  ;;  %v174_v16 = vadd.f32 %v244_v14, %v197_v12 }
  0xe4   :  { %v149_v17 = vpop.f32.mrf.mxu0  ;;  %v165_v18 = vpop.f32.mrf.mxu1 }
  0xe5   :  { %v181_v19 = vmax.f32 %v158_v15, 0.0  ;;  %v185_v20 = vmax.f32 %v174_v16, 0.0  ;;  %v150_v21 = vadd.f32 %v197_v12, %v149_v17  ;;  %v166_v22 = vadd.f32 %v197_v12, %v165_v18 }
  0xe6   :  { %v241_v23 = vpop.f32.mrf.mxu0  ;;  %v245_v24 = vpop.f32.mrf.mxu1 }
  0xe7   :  { %188 = vst [vmem:[%s357_s3 + $0x10] sm:$0xff] %v181_v19  ;;  %192 = vst [vmem:[%s357_s3 + $0x30] sm:$0xff] %v185_v20  ;;  %v179_v25 = vmax.f32 %v150_v21, 0.0  ;;  %v183_v26 = vmax.f32 %v166_v22, 0.0  ;;  %v161_v27 = vadd.f32 %v241_v23, %v197_v12 }
  0xe8   :  { %v152_v28 = vpop.f32.mrf.mxu0  ;;  %v168_v29 = vpop.f32.mrf.mxu1 }
  0xe9   :  { %186 = vst [vmem:[%s357_s3] sm:$0xff] %v179_v25  ;;  %190 = vst [vmem:[%s357_s3 + $0x20] sm:$0xff] %v183_v26  ;;  %v182_v30 = vmax.f32 %v161_v27, 0.0  ;;  %v153_v31 = vadd.f32 %v197_v12, %v152_v28  ;;  %v169_v32 = vadd.f32 %v197_v12, %v168_v29 }
  0xeb   :  { %189 = vst [vmem:[%s357_s3 + $0x18] sm:$0xff] %v182_v30  ;;  %v180_v33 = vmax.f32 %v153_v31, 0.0  ;;  %v184_v34 = vmax.f32 %v169_v32, 0.0 }
  0xed   :  { %187 = vst [vmem:[%s357_s3 + $0x8] sm:$0xff] %v180_v33  ;;  %191 = vst [vmem:[%s357_s3 + $0x28] sm:$0xff] %v184_v34 }

// kernel: model_forward.11
= control target key start
LH: loop header
LB: loop body
LE: loop exit
PB: predicated region body
PF: predicated region fallthrough
CT: control target
= control target key end

     0   :  { %s639_s12 = smov 0   ;;  %s715_s0 = inlined_call_operand.vmem [shape: bf16[256,128], index: 0, kind: input, shape index: {}]   ;;  %s716_s1 = inlined_call_operand.vmem [shape: bf16[128,128], index: 1, kind: input, shape index: {}]   ;;  %s717_s2 = inlined_call_operand.vmem [shape: f32[1,128], index: 2, kind: input, shape index: {}]   ;;  %s718_s3 = inlined_call_operand.vmem [shape: f32[256,128], index: 3, kind: output, shape index: {}]  }
   0x1 LB: > { %s495_s13 = sadd.s32 4294967295, %s617_s12   ;;  %p499_p0 = scmp.ge.s32.totalorder %s617_s12, 1  ;;  %s617_s12 = sphi %s639_s12, %s13_s12  }
   0x2   : > { %p138_p1 = scmp.lt.s32.totalorder %s617_s12, 3 }
   0x4   : > { %p139_p2 = pnand %p499_p0, %p138_p1 }
   0x5   : > { %s500_s16 = sshll.u32 (!%p139_p2), %s495_s13, 4 }
   0x6   : > { %142 = sbr.rel (%p139_p2) target bundleno = 256 (0x100), region = 32  ;;  %p163_p3 = scmp.lt.s32.totalorder (!%p139_p2), %s500_s16, 31 }
   0xb   : > { %v595_v0 = vld [vmem:[%s716_s1 + $0x38] sm:$0xff]   ;;  %v596_v1 = vld [vmem:[%s716_s1 + $0x30] sm:$0xff]   ;;  %s720_s16 = smov (!%p163_p3, %s500_s16), 31  ;;  %v597_v2 = vld [vmem:[%s716_s1 + $0x28] sm:$0xff]  }
   0xc   : > { %539 = vmatprep.subr.bf16.mxu0 %v595_v0  ;;  %571 = vmatprep.subr.bf16.mxu1 %v595_v0  ;;  %s501_s21 = sshll.u32 %s720_s16, 2  ;;  %v598_v3 = vld [vmem:[%s716_s1 + $0x20] sm:$0xff]   ;;  %v599_v6 = vld [vmem:[%s716_s1 + $0x18] sm:$0xff]   ;;  %v600_v7 = vld [vmem:[%s716_s1 + $0x10] sm:$0xff]   ;;  %s503_s10 = sshll.u32 %s720_s16, 3 }
   0xd   : > { %540 = vmatpush3.bf16.msra.mxu0 %v595_v0  ;;  %579 = vmatpush3.bf16.msra.mxu1 %v595_v0  ;;  %s662_s24 = scalar_lea.vmem %s715_s0, %s501_s21  ;;  %v601_v8 = vld [vmem:[%s716_s1 + $0x8] sm:$0xff]   ;;  %v602_v9 = vld [vmem:[%s716_s1] sm:$0xff]   ;;  %s694_s14 = scalar_lea.vmem %s718_s3, %s503_s10 }
   0xe   : > { %541 = vmatprep.subr.bf16.mxu0 %v596_v1  ;;  %572 = vmatprep.subr.bf16.mxu1 %v596_v1  ;;  %v603_v4 = vld [vmem:[%s662_s24] sm:$0xff]   ;;  %v605_v10 = vld [vmem:[%s662_s24 + $0x8] sm:$0xff]   ;;  %v607_v12 = vld [vmem:[%s662_s24 + $0x10] sm:$0xff]  }
   0xf   : > { %v604_v5 = vld [vmem:[%s662_s24 + $0x20] sm:$0xff]   ;;  %555 = vmatprep.mubr.bf16.mxu0 %v603_v4  ;;  %v606_v11 = vld [vmem:[%s662_s24 + $0x28] sm:$0xff]   ;;  %v608_v13 = vld [vmem:[%s662_s24 + $0x30] sm:$0xff]  }
  0x10   : > { %563 = vmatprep.mubr.bf16.mxu1 %v604_v5  ;;  %v609_v14 = vld [vmem:[%s662_s24 + $0x18] sm:$0xff]   ;;  %v504_v16 = vld [vmem:[%s717_s2] ss:$0 sm:$0xff] }
  0x11   : > { %542 = vmatpush3.bf16.msra.mxu0 %v596_v1  ;;  %580 = vmatpush3.bf16.msra.mxu1 %v596_v1  ;;  %v610_v15 = vld [vmem:[%s662_s24 + $0x38] sm:$0xff]  }
  0x12   : > { %543 = vmatprep.subr.bf16.mxu0 %v597_v2  ;;  %573 = vmatprep.subr.bf16.mxu1 %v597_v2 }
  0x15   : > { %544 = vmatpush3.bf16.msra.mxu0 %v597_v2  ;;  %581 = vmatpush3.bf16.msra.mxu1 %v597_v2 }
  0x16   : > { %545 = vmatprep.subr.bf16.mxu0 %v598_v3  ;;  %574 = vmatprep.subr.bf16.mxu1 %v598_v3 }
  0x19   : > { %546 = vmatpush3.bf16.msra.mxu0 %v598_v3  ;;  %582 = vmatpush3.bf16.msra.mxu1 %v598_v3 }
  0x1a   : > { %547 = vmatprep.subr.bf16.mxu0 %v599_v6  ;;  %575 = vmatprep.subr.bf16.mxu1 %v599_v6 }
  0x1d   : > { %548 = vmatpush3.bf16.msra.mxu0 %v599_v6  ;;  %583 = vmatpush3.bf16.msra.mxu1 %v599_v6 }
  0x1e   : > { %549 = vmatprep.subr.bf16.mxu0 %v600_v7  ;;  %576 = vmatprep.subr.bf16.mxu1 %v600_v7 }
  0x21   : > { %550 = vmatpush3.bf16.msra.mxu0 %v600_v7  ;;  %584 = vmatpush3.bf16.msra.mxu1 %v600_v7 }
  0x22   : > { %551 = vmatprep.subr.bf16.mxu0 %v601_v8  ;;  %577 = vmatprep.subr.bf16.mxu1 %v601_v8 }
  0x25   : > { %552 = vmatpush3.bf16.msra.mxu0 %v601_v8  ;;  %585 = vmatpush3.bf16.msra.mxu1 %v601_v8 }
  0x26   : > { %553 = vmatprep.subr.bf16.mxu0 %v602_v9  ;;  %578 = vmatprep.subr.bf16.mxu1 %v602_v9 }
  0x29   : > { %554 = vmatpush3.bf16.msra.mxu0 %v602_v9  ;;  %586 = vmatpush3.bf16.msra.mxu1 %v602_v9 }
  0x2c   : > { %556 = vmatmul.mubr.bf16.vlgmr.msra.gmra.mxu0 %v605_v10  ;;  %564 = vmatmul.mubr.bf16.vlgmr.msra.gmra.mxu1 %v606_v11 }
  0x2d   : > { %559 = vmatprep.mubr.bf16.mxu0 %v607_v12  ;;  %567 = vmatprep.mubr.bf16.mxu1 %v608_v13 }
  0x34   : > { %560 = vmatmul.mubr.bf16.gmra.mxu0 %v609_v14  ;;  %568 = vmatmul.mubr.bf16.gmra.mxu1 %v610_v15 }
  0xec   : > { %v557_v17 = vpop.f32.mrf.mxu0  ;;  %v565_v18 = vpop.f32.mrf.mxu1 }
  0xed   : > { %v353_v19 = vadd.f32 %v557_v17, %v504_v16  ;;  %v385_v20 = vadd.f32 %v565_v18, %v504_v16 }
  0xee   : > { %v344_v21 = vpop.f32.mrf.mxu0  ;;  %v376_v22 = vpop.f32.mrf.mxu1 }
  0xef   : > { %v409_v23 = vmax.f32 %v353_v19, 0.0  ;;  %v417_v24 = vmax.f32 %v385_v20, 0.0  ;;  %v345_v25 = vadd.f32 %v504_v16, %v344_v21  ;;  %v377_v26 = vadd.f32 %v504_v16, %v376_v22 }
  0xf0   : > { %v558_v27 = vpop.f32.mrf.mxu0  ;;  %v566_v28 = vpop.f32.mrf.mxu1 }
  0xf1   : > { %425 = vst [vmem:[%s694_s14 + $0x10] sm:$0xff] %v409_v23  ;;  %433 = vst [vmem:[%s694_s14 + $0x50] sm:$0xff] %v417_v24  ;;  %v407_v29 = vmax.f32 %v345_v25, 0.0  ;;  %v415_v30 = vmax.f32 %v377_v26, 0.0  ;;  %v356_v31 = vadd.f32 %v558_v27, %v504_v16  ;;  %v388_v32 = vadd.f32 %v566_v28, %v504_v16 }
  0xf2   : > { %v347_v33 = vpop.f32.mrf.mxu0  ;;  %v379_v34 = vpop.f32.mrf.mxu1 }
  0xf3   : > { %423 = vst [vmem:[%s694_s14] sm:$0xff] %v407_v29  ;;  %431 = vst [vmem:[%s694_s14 + $0x40] sm:$0xff] %v415_v30  ;;  %v410_v35 = vmax.f32 %v356_v31, 0.0  ;;  %v418_v36 = vmax.f32 %v388_v32, 0.0  ;;  %v348_v37 = vadd.f32 %v504_v16, %v347_v33  ;;  %v380_v38 = vadd.f32 %v504_v16, %v379_v34 }
  0xf4   : > { %v561_v39 = vpop.f32.mrf.mxu0  ;;  %v569_v40 = vpop.f32.mrf.mxu1 }
  0xf5   : > { %426 = vst [vmem:[%s694_s14 + $0x18] sm:$0xff] %v410_v35  ;;  %434 = vst [vmem:[%s694_s14 + $0x58] sm:$0xff] %v418_v36  ;;  %v408_v41 = vmax.f32 %v348_v37, 0.0  ;;  %v416_v42 = vmax.f32 %v380_v38, 0.0  ;;  %v369_v43 = vadd.f32 %v561_v39, %v504_v16  ;;  %v401_v44 = vadd.f32 %v569_v40, %v504_v16 }
  0xf6   : > { %v360_v45 = vpop.f32.mrf.mxu0  ;;  %v392_v46 = vpop.f32.mrf.mxu1 }
  0xf7   : > { %424 = vst [vmem:[%s694_s14 + $0x8] sm:$0xff] %v408_v41  ;;  %432 = vst [vmem:[%s694_s14 + $0x48] sm:$0xff] %v416_v42  ;;  %v413_v47 = vmax.f32 %v369_v43, 0.0  ;;  %v421_v48 = vmax.f32 %v401_v44, 0.0  ;;  %v361_v49 = vadd.f32 %v504_v16, %v360_v45  ;;  %v393_v50 = vadd.f32 %v504_v16, %v392_v46 }
  0xf8   : > { %v562_v51 = vpop.f32.mrf.mxu0  ;;  %v570_v52 = vpop.f32.mrf.mxu1 }
  0xf9   : > { %429 = vst [vmem:[%s694_s14 + $0x30] sm:$0xff] %v413_v47  ;;  %437 = vst [vmem:[%s694_s14 + $0x70] sm:$0xff] %v421_v48  ;;  %v411_v53 = vmax.f32 %v361_v49, 0.0  ;;  %v419_v54 = vmax.f32 %v393_v50, 0.0  ;;  %v372_v55 = vadd.f32 %v562_v51, %v504_v16  ;;  %v404_v56 = vadd.f32 %v570_v52, %v504_v16 }
  0xfa   : > { %v363_v57 = vpop.f32.mrf.mxu0  ;;  %v395_v58 = vpop.f32.mrf.mxu1 }
  0xfb   : > { %427 = vst [vmem:[%s694_s14 + $0x20] sm:$0xff] %v411_v53  ;;  %435 = vst [vmem:[%s694_s14 + $0x60] sm:$0xff] %v419_v54  ;;  %v414_v59 = vmax.f32 %v372_v55, 0.0  ;;  %v422_v60 = vmax.f32 %v404_v56, 0.0  ;;  %v364_v61 = vadd.f32 %v504_v16, %v363_v57  ;;  %v396_v62 = vadd.f32 %v504_v16, %v395_v58 }
  0xfd   : > { %430 = vst [vmem:[%s694_s14 + $0x38] sm:$0xff] %v414_v59  ;;  %438 = vst [vmem:[%s694_s14 + $0x78] sm:$0xff] %v422_v60  ;;  %v412_v63 = vmax.f32 %v364_v61, 0.0  ;;  %v420_v0 = vmax.f32 %v396_v62, 0.0 }
  0xff   : > { %428 = vst [vmem:[%s694_s14 + $0x28] sm:$0xff] %v412_v63  ;;  %436 = vst [vmem:[%s694_s14 + $0x68] sm:$0xff] %v420_v0 }
 0x100 PF: > { %s13_s12 = sadd.s32 1, %s617_s12  }
 0x101   : > { %p10_p4 = scmp.ge.s32.totalorder %s13_s12, 4  }
 0x103   :  { %12 = sbr.rel (!%p10_p4) target bundleno = 1 (0x1), region = 62 }

</bundles_post_ra>
